<compile_context>
chip_gen: v7x
topology: tpu7x:2x2x1
jax: 0.10.0
libtpu: 0.0.40
codegen_flags: <defaults>
</compile_context>

<pallas_src>
import jax
import jax.numpy as jnp
from jax.experimental import pallas as pl
from jax.experimental.pallas import tpu as pltpu


def _round_up(x, m):
    return ((x + m - 1) // m) * m


def _make_conv_kernel(K, stride, TH, Wo, Cin, Cpad, is_last):
    KKC = K * K * Cin
    TH_in = (TH - 1) * stride + K  # input rows needed per output row-tile

    def conv_kernel(xpad_ref, w_ref, b_ref, o_ref, im2col_ref):
        # xpad_ref  : (1, Hp, Wp, Cin)   padded NHWC image (VMEM-resident
        #                                across the whole row-tile axis)
        # w_ref     : (K*K*Cin, Cpad)    im2col weight slab (lane-dense)
        # b_ref     : (1, Cpad)          zero-padded bias
        # o_ref     : (1, TH, Wo, Cpad)  lane-dense output row tile
        # im2col_ref: (TH, Wo, K*K*Cin)  VMEM scratch for the packed patches
        j = pl.program_id(1)
        r0 = j * (TH * stride)  # first padded-input row of this tile
        if (TH * stride) % 8 == 0:
            r0 = pl.multiple_of(r0, 8)
        xw = xpad_ref[0, pl.ds(r0, TH_in), :, :]  # (TH_in, Wp, Cin)

        # im2col: pack the K*K shifted taps along the channel (lane) axis so
        # the convolution is a single MXU matmul with contraction K*K*Cin.
        # TODO(synk): for stride > 1 pre-split the padded input into stride
        # phases (space-to-depth) so all in-kernel slices are contiguous.
        for ky in range(K):
            for kx in range(K):
                tap = jax.lax.slice(
                    xw,
                    (ky, kx, 0),
                    (ky + (TH - 1) * stride + 1,
                     kx + (Wo - 1) * stride + 1,
                     Cin),
                    strides=(stride, stride, 1),
                )  # (TH, Wo, Cin)
                t = ky * K + kx
                im2col_ref[:, :, t * Cin:(t + 1) * Cin] = tap

        patch = im2col_ref[...].reshape(TH * Wo, KKC)  # free when Wo % 8 == 0
        acc = jnp.dot(patch, w_ref[...],
                      preferred_element_type=jnp.float32)  # (TH*Wo, Cpad) f32
        acc = acc + b_ref[...].astype(jnp.float32)
        if not is_last:
            acc = jnp.maximum(acc, 0.0)
        o_ref[0] = acc.reshape(TH, Wo, Cpad).astype(o_ref.dtype)

    return conv_kernel


def conv_layer_forward(x_nchw, weight, bias, *, stride=1, is_last=False,
                       compute_dtype=jnp.float32):
    """Equivalent of ConvLayer.forward (NCHW in / NCHW out).

    x_nchw : (N, Cin, H, W)
    weight : (Cout, Cin, K, K)  (PyTorch Conv2d layout)
    bias   : (Cout,)
    compute_dtype: dtype of the matmul operands (f32 or bf16); accumulation,
                   bias add and ReLU are always f32.
    """
    N, Cin, H, W = x_nchw.shape
    Cout, Cin_w, K, K_w = weight.shape
    assert Cin_w == Cin and K_w == K
    p = K // 2  # ReflectionPad2d(floor(kernel_size / 2))

    # ---- wrapper glue (plain XLA) -----------------------------------------
    # TODO(synk): when chaining ConvLayers, keep activations NHWC and fold the
    # reflection pad into the kernel to remove these extra HBM passes.
    x_nhwc = jnp.transpose(x_nchw, (0, 2, 3, 1))
    x_pad = jnp.pad(x_nhwc, ((0, 0), (p, p), (p, p), (0, 0)),
                    mode="reflect").astype(compute_dtype)
    Hp, Wp = H + 2 * p, W + 2 * p
    Ho = (Hp - K) // stride + 1
    Wo = (Wp - K) // stride + 1

    # im2col weight slab (K*K*Cin, Cout), zero-padded on lanes to a multiple
    # of 128 so the matmul/epilogue/store are lane-dense.
    KKC = K * K * Cin
    Cpad = _round_up(Cout, 128)
    w_mat = jnp.transpose(weight, (2, 3, 1, 0)).reshape(KKC, Cout)
    w_mat = jnp.pad(w_mat, ((0, 0), (0, Cpad - Cout))).astype(compute_dtype)
    b_pad = jnp.pad(bias, (0, Cpad - Cout)).reshape(1, Cpad).astype(jnp.float32)

    # Spatial row tiling: TH output rows per grid step (keeps the f32
    # accumulator near 128 rows x 128 lanes ~= 16 vregs).
    if Ho % 8 == 0:
        TH = 8
        while Ho % (2 * TH) == 0 and (2 * TH) * Wo <= 128:
            TH *= 2
    else:
        TH = Ho  # fall back to one row-tile per image
    nH = Ho // TH

    # Explicit VMEM budget (v7x has only 64 MiB; stay well under it).
    in_bytes = Hp * Wp * Cin * jnp.dtype(compute_dtype).itemsize
    out_bytes = TH * Wo * Cpad * jnp.dtype(x_nchw.dtype).itemsize
    w_bytes = KKC * Cpad * jnp.dtype(compute_dtype).itemsize + 4 * Cpad
    scratch_bytes = TH * Wo * KKC * jnp.dtype(compute_dtype).itemsize
    acc_bytes = TH * Wo * Cpad * 4
    need = 2 * in_bytes + 2 * out_bytes + w_bytes + scratch_bytes + acc_bytes
    vmem_limit = int(min(48 << 20, max(16 << 20, 2 * need)))

    kernel = _make_conv_kernel(K, stride, TH, Wo, Cin, Cpad, is_last)

    out_padded = pl.pallas_call(
        kernel,
        out_shape=jax.ShapeDtypeStruct((N, Ho, Wo, Cpad), x_nchw.dtype),
        grid=(N, nH),
        in_specs=[
            # Full padded image per batch element; block index is constant in
            # j, so Pallas keeps it resident (no re-DMA) across the row tiles.
            pl.BlockSpec((1, Hp, Wp, Cin), lambda n, j: (n, 0, 0, 0)),
            pl.BlockSpec((KKC, Cpad), lambda n, j: (0, 0)),
            pl.BlockSpec((1, Cpad), lambda n, j: (0, 0)),
        ],
        out_specs=pl.BlockSpec((1, TH, Wo, Cpad), lambda n, j: (n, j, 0, 0)),
        scratch_shapes=[pltpu.VMEM((TH, Wo, KKC), compute_dtype)],
        compiler_params=pltpu.CompilerParams(
            dimension_semantics=("parallel", "parallel"),
            vmem_limit_bytes=vmem_limit,
        ),
    )(x_pad, w_mat, b_pad)

    # Drop the lane padding and go back to NCHW; XLA fuses the slice into the
    # transpose it must do anyway.
    return jnp.transpose(out_padded[..., :Cout], (0, 3, 1, 2))


def _reference_forward(x_nchw, weight, bias, *, stride=1, is_last=False):
    """Pure-JAX reference (mirrors ReflectionPad2d + Conv2d + ReLU)."""
    K = weight.shape[-1]
    p = K // 2
    x_pad = jnp.pad(x_nchw, ((0, 0), (0, 0), (p, p), (p, p)), mode="reflect")
    out = jax.lax.conv_general_dilated(
        x_pad, weight,
        window_strides=(stride, stride),
        padding="VALID",
        dimension_numbers=("NCHW", "OIHW", "NCHW"),
    ) + bias.reshape(1, -1, 1, 1)
    if not is_last:
        out = jnp.maximum(out, 0.0)
    return out


if __name__ == "__main__":
    # Small shapes consistent with the module: batch=2, in_ch=4, out_ch=8,
    # spatial=16x16, kernel_size=3, stride=1.
    N, Cin, H, W = 2, 4, 16, 16
    Cout, K, stride = 8, 3, 1

    key = jax.random.PRNGKey(0)
    kx_, kw_, kb_ = jax.random.split(key, 3)
    x = jax.random.normal(kx_, (N, Cin, H, W), dtype=jnp.float32)
    fan_in = Cin * K * K
    weight = jax.random.normal(kw_, (Cout, Cin, K, K),
                               dtype=jnp.float32) / jnp.sqrt(fan_in)
    bias = jax.random.normal(kb_, (Cout,), dtype=jnp.float32) * 0.01

    # f32 matmul operands, with ReLU (is_last=False).
    out = jax.block_until_ready(
        conv_layer_forward(x, weight, bias, stride=stride, is_last=False))
    ref = _reference_forward(x, weight, bias, stride=stride, is_last=False)
    assert out.shape == (N, Cout, H, W), out.shape
    assert jnp.allclose(out, ref, atol=1e-4, rtol=1e-4), \
        float(jnp.max(jnp.abs(out - ref)))

    # f32, no ReLU (is_last=True).
    out_last = jax.block_until_ready(
        conv_layer_forward(x, weight, bias, stride=stride, is_last=True))
    ref_last = _reference_forward(x, weight, bias, stride=stride, is_last=True)
    assert jnp.allclose(out_last, ref_last, atol=1e-4, rtol=1e-4), \
        float(jnp.max(jnp.abs(out_last - ref_last)))

    # bf16 matmul operands with f32 accumulation (looser tolerance).
    out_bf16 = jax.block_until_ready(
        conv_layer_forward(x, weight, bias, stride=stride, is_last=False,
                           compute_dtype=jnp.bfloat16))
    assert jnp.allclose(out_bf16, ref, atol=5e-2, rtol=5e-2), \
        float(jnp.max(jnp.abs(out_bf16 - ref)))

    print("KERNEL_OK")
</pallas_src>

<mosaic_0001>
module attributes {stable_mosaic.version = 11 : i64} {
  func.func @conv_kernel(%arg0: i32, %arg1: i32, %arg2: memref<1x18x18x4xf32, #tpu.memory_space<vmem>>, %arg3: memref<36x128xf32, #tpu.memory_space<vmem>>, %arg4: memref<1x128xf32, #tpu.memory_space<vmem>>, %arg5: memref<1x8x16x128xf32, #tpu.memory_space<vmem>>, %arg6: memref<8x16x36xf32, #tpu.memory_space<vmem>>) attributes {dimension_semantics = [#tpu.dimension_semantics<parallel>, #tpu.dimension_semantics<parallel>], iteration_bounds = array<i64: 2, 2>, scalar_prefetch = 0 : i64, scratch_operands = 1 : i64, tpu.core_type = #tpu.core_type<tc>, window_params = [{transform_indices = @transform_0, window_bounds = array<i64: 1, 18, 18, 4>}, {pipeline_mode = #tpu.pipeline_mode<synchronous>, transform_indices = @transform_1, window_bounds = array<i64: 36, 128>}, {pipeline_mode = #tpu.pipeline_mode<synchronous>, transform_indices = @transform_2, window_bounds = array<i64: 1, 128>}, {transform_indices = @transform_3, window_bounds = array<i64: 1, 8, 16, 128>}]} {
    %c8_i32 = arith.constant 8 : i32
    %0 = arith.muli %arg1, %c8_i32 : i32
    %1 = tpu.assume_multiple %0, 8 : i32
    %c0 = arith.constant 0 : index
    %2 = arith.index_cast %1 : i32 to index
    %c0_0 = arith.constant 0 : index
    %c0_1 = arith.constant 0 : index
    %3 = vector.load %arg2[%c0, %2, %c0_0, %c0_1] : memref<1x18x18x4xf32, #tpu.memory_space<vmem>>, vector<1x10x18x4xf32>
    %4 = vector.shape_cast %3 : vector<1x10x18x4xf32> to vector<10x18x4xf32>
    %5 = vector.extract_strided_slice %4 {offsets = [0, 0, 0], sizes = [8, 16, 4], strides = [1, 1, 1]} : vector<10x18x4xf32> to vector<8x16x4xf32>
    %c0_2 = arith.constant 0 : index
    %c0_3 = arith.constant 0 : index
    %c0_4 = arith.constant 0 : index
    %6 = vector.load %arg6[%c0_2, %c0_3, %c0_4] : memref<8x16x36xf32, #tpu.memory_space<vmem>>, vector<8x16x4xf32>
    tpu.vector_store %arg6[%c0_2, %c0_3, %c0_4], %5 {strides = array<i32>} : memref<8x16x36xf32, #tpu.memory_space<vmem>>, vector<8x16x4xf32>,
    %7 = vector.extract_strided_slice %4 {offsets = [0, 1, 0], sizes = [8, 16, 4], strides = [1, 1, 1]} : vector<10x18x4xf32> to vector<8x16x4xf32>
    %c0_5 = arith.constant 0 : index
    %c0_6 = arith.constant 0 : index
    %c4 = arith.constant 4 : index
    %8 = vector.load %arg6[%c0_5, %c0_6, %c4] : memref<8x16x36xf32, #tpu.memory_space<vmem>>, vector<8x16x4xf32>
    tpu.vector_store %arg6[%c0_5, %c0_6, %c4], %7 {strides = array<i32>} : memref<8x16x36xf32, #tpu.memory_space<vmem>>, vector<8x16x4xf32>,
    %9 = vector.extract_strided_slice %4 {offsets = [0, 2, 0], sizes = [8, 16, 4], strides = [1, 1, 1]} : vector<10x18x4xf32> to vector<8x16x4xf32>
    %c0_7 = arith.constant 0 : index
    %c0_8 = arith.constant 0 : index
    %c8 = arith.constant 8 : index
    %10 = vector.load %arg6[%c0_7, %c0_8, %c8] : memref<8x16x36xf32, #tpu.memory_space<vmem>>, vector<8x16x4xf32>
    tpu.vector_store %arg6[%c0_7, %c0_8, %c8], %9 {strides = array<i32>} : memref<8x16x36xf32, #tpu.memory_space<vmem>>, vector<8x16x4xf32>,
    %11 = vector.extract_strided_slice %4 {offsets = [1, 0, 0], sizes = [8, 16, 4], strides = [1, 1, 1]} : vector<10x18x4xf32> to vector<8x16x4xf32>
    %c0_9 = arith.constant 0 : index
    %c0_10 = arith.constant 0 : index
    %c12 = arith.constant 12 : index
    %12 = vector.load %arg6[%c0_9, %c0_10, %c12] : memref<8x16x36xf32, #tpu.memory_space<vmem>>, vector<8x16x4xf32>
    tpu.vector_store %arg6[%c0_9, %c0_10, %c12], %11 {strides = array<i32>} : memref<8x16x36xf32, #tpu.memory_space<vmem>>, vector<8x16x4xf32>,
    %13 = vector.extract_strided_slice %4 {offsets = [1, 1, 0], sizes = [8, 16, 4], strides = [1, 1, 1]} : vector<10x18x4xf32> to vector<8x16x4xf32>
    %c0_11 = arith.constant 0 : index
    %c0_12 = arith.constant 0 : index
    %c16 = arith.constant 16 : index
    %14 = vector.load %arg6[%c0_11, %c0_12, %c16] : memref<8x16x36xf32, #tpu.memory_space<vmem>>, vector<8x16x4xf32>
    tpu.vector_store %arg6[%c0_11, %c0_12, %c16], %13 {strides = array<i32>} : memref<8x16x36xf32, #tpu.memory_space<vmem>>, vector<8x16x4xf32>,
    %15 = vector.extract_strided_slice %4 {offsets = [1, 2, 0], sizes = [8, 16, 4], strides = [1, 1, 1]} : vector<10x18x4xf32> to vector<8x16x4xf32>
    %c0_13 = arith.constant 0 : index
    %c0_14 = arith.constant 0 : index
    %c20 = arith.constant 20 : index
    %16 = vector.load %arg6[%c0_13, %c0_14, %c20] : memref<8x16x36xf32, #tpu.memory_space<vmem>>, vector<8x16x4xf32>
    tpu.vector_store %arg6[%c0_13, %c0_14, %c20], %15 {strides = array<i32>} : memref<8x16x36xf32, #tpu.memory_space<vmem>>, vector<8x16x4xf32>,
    %17 = vector.extract_strided_slice %4 {offsets = [2, 0, 0], sizes = [8, 16, 4], strides = [1, 1, 1]} : vector<10x18x4xf32> to vector<8x16x4xf32>
    %c0_15 = arith.constant 0 : index
    %c0_16 = arith.constant 0 : index
    %c24 = arith.constant 24 : index
    %18 = vector.load %arg6[%c0_15, %c0_16, %c24] : memref<8x16x36xf32, #tpu.memory_space<vmem>>, vector<8x16x4xf32>
    tpu.vector_store %arg6[%c0_15, %c0_16, %c24], %17 {strides = array<i32>} : memref<8x16x36xf32, #tpu.memory_space<vmem>>, vector<8x16x4xf32>,
    %19 = vector.extract_strided_slice %4 {offsets = [2, 1, 0], sizes = [8, 16, 4], strides = [1, 1, 1]} : vector<10x18x4xf32> to vector<8x16x4xf32>
    %c0_17 = arith.constant 0 : index
    %c0_18 = arith.constant 0 : index
    %c28 = arith.constant 28 : index
    %20 = vector.load %arg6[%c0_17, %c0_18, %c28] : memref<8x16x36xf32, #tpu.memory_space<vmem>>, vector<8x16x4xf32>
    tpu.vector_store %arg6[%c0_17, %c0_18, %c28], %19 {strides = array<i32>} : memref<8x16x36xf32, #tpu.memory_space<vmem>>, vector<8x16x4xf32>,
    %21 = vector.extract_strided_slice %4 {offsets = [2, 2, 0], sizes = [8, 16, 4], strides = [1, 1, 1]} : vector<10x18x4xf32> to vector<8x16x4xf32>
    %c0_19 = arith.constant 0 : index
    %c0_20 = arith.constant 0 : index
    %c32 = arith.constant 32 : index
    %22 = vector.load %arg6[%c0_19, %c0_20, %c32] : memref<8x16x36xf32, #tpu.memory_space<vmem>>, vector<8x16x4xf32>
    tpu.vector_store %arg6[%c0_19, %c0_20, %c32], %21 {strides = array<i32>} : memref<8x16x36xf32, #tpu.memory_space<vmem>>, vector<8x16x4xf32>,
    %c0_21 = arith.constant 0 : index
    %c0_22 = arith.constant 0 : index
    %c0_23 = arith.constant 0 : index
    %23 = vector.load %arg6[%c0_21, %c0_22, %c0_23] : memref<8x16x36xf32, #tpu.memory_space<vmem>>, vector<8x16x36xf32>
    %24 = vector.shape_cast %23 : vector<8x16x36xf32> to vector<128x36xf32>
    %c0_24 = arith.constant 0 : index
    %c0_25 = arith.constant 0 : index
    %25 = vector.load %arg3[%c0_24, %c0_25] : memref<36x128xf32, #tpu.memory_space<vmem>>, vector<36x128xf32>
    %cst = arith.constant dense<0.000000e+00> : vector<128x128xf32>
    %26 = tpu.matmul %24, %25, %cst {dimension_numbers = #tpu.dot_dimension_numbers<[1], [0], [0], [1], [0, 0, 1, 1], [], []>} : vector<128x36xf32>, vector<36x128xf32>, vector<128x128xf32> -> vector<128x128xf32>
    %c0_26 = arith.constant 0 : index
    %c0_27 = arith.constant 0 : index
    %27 = vector.load %arg4[%c0_26, %c0_27] : memref<1x128xf32, #tpu.memory_space<vmem>>, vector<1x128xf32>
    %28 = vector.broadcast %27 : vector<1x128xf32> to vector<128x128xf32>
    %29 = arith.addf %26, %28 : vector<128x128xf32>
    %cst_28 = arith.constant 0.000000e+00 : f32
    %30 = vector.broadcast %cst_28 : f32 to vector<128x128xf32>
    %31 = arith.maximumf %29, %30 : vector<128x128xf32>
    %32 = vector.shape_cast %31 : vector<128x128xf32> to vector<8x16x128xf32>
    %c0_29 = arith.constant 0 : index
    %c0_30 = arith.constant 0 : index
    %c0_31 = arith.constant 0 : index
    %c0_32 = arith.constant 0 : index
    %33 = vector.load %arg5[%c0_29, %c0_30, %c0_31, %c0_32] : memref<1x8x16x128xf32, #tpu.memory_space<vmem>>, vector<1x8x16x128xf32>
    %34 = vector.shape_cast %33 : vector<1x8x16x128xf32> to vector<8x16x128xf32>
    %35 = vector.shape_cast %32 : vector<8x16x128xf32> to vector<1x8x16x128xf32>
    tpu.vector_store %arg5[%c0_29, %c0_30, %c0_31, %c0_32], %35 {strides = array<i32>} : memref<1x8x16x128xf32, #tpu.memory_space<vmem>>, vector<1x8x16x128xf32>,
    return
  }
  func.func @transform_0(%arg0: i32, %arg1: i32) -> (i32, i32, i32, i32) {
    %c0_i32 = arith.constant 0 : i32
    %c0_i32_0 = arith.constant 0 : i32
    %c0_i32_1 = arith.constant 0 : i32
    %c0_i32_2 = arith.constant 0 : i32
    return %arg0, %c0_i32, %c0_i32_0, %c0_i32_1 : i32, i32, i32, i32
  }
  func.func @transform_1(%arg0: i32, %arg1: i32) -> (i32, i32) {
    %c0_i32 = arith.constant 0 : i32
    %c0_i32_0 = arith.constant 0 : i32
    %c0_i32_1 = arith.constant 0 : i32
    return %c0_i32, %c0_i32_0 : i32, i32
  }
  func.func @transform_2(%arg0: i32, %arg1: i32) -> (i32, i32) {
    %c0_i32 = arith.constant 0 : i32
    %c0_i32_0 = arith.constant 0 : i32
    %c0_i32_1 = arith.constant 0 : i32
    return %c0_i32, %c0_i32_0 : i32, i32
  }
  func.func @transform_3(%arg0: i32, %arg1: i32) -> (i32, i32, i32, i32) {
    %c0_i32 = arith.constant 0 : i32
    %c0_i32_0 = arith.constant 0 : i32
    %c0_i32_1 = arith.constant 0 : i32
    return %arg0, %arg1, %c0_i32, %c0_i32_0 : i32, i32, i32, i32
  }
}

</mosaic_0001>

<bundles_post_ra>
// kernel: tpu_custom_call.1
= control target key start
LH: loop header
LB: loop body
LE: loop exit
PB: predicated region body
PF: predicated region fallthrough
CT: control target
= control target key end

     0   :  { %8 = vsyncpa [#allocation4], 0  ;;  %s2494_s0 = inlined_call_operand.vmem [shape: f32[2,18,18,4], index: 0, kind: input, shape index: {}]   ;;  %s2495_s1 = inlined_call_operand.vmem [shape: f32[36,128], index: 1, kind: input, shape index: {}]   ;;  %s2496_s2 = inlined_call_operand.vmem [shape: f32[1,128], index: 2, kind: input, shape index: {}]   ;;  %s2497_s3 = inlined_call_operand.hbm [shape: f32[2,16,16,128], index: 3, kind: output, shape index: {}]  }
   0x1   :  { %10 = vsyncpa [#allocation4 + $0x1], 0  ;;  %s1652_s12 = smov 0   ;;  %s1654_s13 = smov 0  }
   0x2   :  { %s1656_s14 = smov 0   ;;  %s1658_s15 = smov 0  }
   0x3   :  { %s1660_s16 = smov 0   ;;  %s1662_s17 = smov 0  }
   0x4   :  { %s1664_s18 = smov 0   ;;  %s1666_s19 = smov 0  }
   0x5 LB: > { %s1341_s20 = sadd.s32 4294967295, %s1620_s19   ;;  %s1342_s21 = sadd.s32 4294967294, %s1620_s19   ;;  %s1620_s19 = sphi %s1666_s19, %s16_s19   ;;  %s1616_s18 = sphi %s1664_s18, %s2526_s18   ;;  %s1612_s17 = sphi %s1662_s17, %s2525_s17   ;;  %s1608_s16 = sphi %s1660_s16, %s2524_s16   ;;  %s1604_s15 = sphi %s1658_s15, %s2523_s15   ;;  %s1600_s14 = sphi %s1656_s14, %s2522_s14   ;;  %s1596_s13 = sphi %s1654_s13, %s2521_s13   ;;  %s1592_s12 = sphi %s1652_s12, %s2520_s12  }
   0x6   : > { %s25_s22 = sadd.s32 1, %s1612_s17  ;;  %s28_s23 = sadd.s32 1, %s1616_s18 }
   0x7   : > { %p26_p0 = scmp.ge.s32.totalorder %s25_s22, 2  ;;  %p115_p1 = scmp.ne.s32.totalorder %s1600_s14, %s1596_s13 }
   0x8   : > { %p116_p2 = scmp.eq.s32.totalorder %s1341_s20, 3  ;;  %p121_p5 = scmp.ne.s32.totalorder %s1596_s13, %s1592_s12 }
   0x9   : > { %s2528_s22 = smov (%p26_p0, %s25_s22), 0  ;;  %s2530_s23 = smov (!%p26_p0, %s28_s23), %s1616_s18 }
   0xa   : > { %s101_s24 = ssub.s32 %s1612_s17, %s2528_s22  ;;  %p1703_p3 = por %p116_p2, %p115_p1 }
   0xb   : > { %p30_p4 = scmp.ge.s32.totalorder %s2530_s23, 2  ;;  %p122_p6 = scmp.eq.s32.totalorder %s1342_s21, 3 }
   0xc   : > { %p1345_p7 = scmp.ge.s32.totalorder %s1620_s19, 1  ;;  %p154_p9 = scmp.lt.s32.totalorder %s1620_s19, 5 }
   0xd   : > { %s2532_s23 = smov (%p30_p4, %s2530_s23), 0  ;;  %p1712_p8 = por %p122_p6, %p121_p5 }
   0xe   : > { %s100_s27 = ssub.s32 %s1616_s18, %s2532_s23  ;;  %s105_s28 = sadd.s32 1, %s1600_s14 }
   0xf   : > { %s102_s29 = sor.u32 %s101_s24, %s100_s27  ;;  %p155_p10 = pnand %p1345_p7, %p154_p9 }
  0x10   : > { %p103_p11 = scmp.eq.s32.totalorder %s102_s29, 0  ;;  %p178_p12 = scmp.lt.s32.totalorder (!%p155_p10), %s1608_s16, 1  ;;  %vm217_vm0 = vcmask (!%p155_p10), 31744   ;;  %vm334_vm1 = vcmask (!%p155_p10), 57376   ;;  %vm330_vm2 = vcmask (!%p155_p10), 64545   ;;  %vm332_vm3 = vcmask (!%p155_p10), 64544  }
  0x11   : > { %158 = sbr.rel (%p155_p10) target bundleno = 735 (0x2df), region = 32  ;;  %s1622_s11 = smov (!%p155_p10), 4   ;;  %v1004_v42 = vld [vmem:[%s2495_s1] sm:$0xff] (!%p155_p10)  ;;  %v1005_v43 = vld [vmem:[%s2495_s1 + $0x8] sm:$0xff] (!%p155_p10)  ;;  %v1006_v47 = vld [vmem:[%s2495_s1 + $0x10] sm:$0xff] (!%p155_p10)  ;;  %vm1065_vm4 = vcmask (!%p155_p10), 1043456  }
  0x12   : > { %s1721_s30 = scalar_select %p103_p11, %s1600_s14, %s105_s28  }
  0x13   : > { %s1349_s5 = smul.u32 (!%p155_p10), 192, %s1604_s15  ;;  %s1623_s20 = smov (!%p155_p10), 8   ;;  %v1431_v44 = vpack.c.bf16 (!%p155_p10), %v1005_v43, %v1004_v42  ;;  %v1007_v48 = vld [vmem:[%s2495_s1 + $0x18] sm:$0xff] (!%p155_p10)  ;;  %v1008_v52 = vld [vmem:[%s2495_s1 + $0x20] sm:$0xf] (!%p155_p10)  ;;  %vm431_vm5 = vcmask (!%p155_p10), 97344  }
  0x14   : > { %s1624_s21 = smov (!%p155_p10), 12   ;;  %s1625_s24 = smov (!%p155_p10), 16   ;;  %v1435_v49 = vpack.c.bf16 (!%p155_p10), %v1007_v48, %v1006_v47  ;;  %vm429_vm6 = vcmask (!%p155_p10), 97346   ;;  %vm433_vm7 = vcmask (!%p155_p10), 91200   ;;  %vm506_vm8 = vcmask (!%p155_p10), 130144  }
  0x15   : > { %s1626_s27 = smov (!%p155_p10), 20   ;;  %s1627_s28 = smov (!%p155_p10), 24   ;;  %1432 = vmatprep.subr.bf16.mxu0 (!%p155_p10), %v1431_v44  ;;  %1439 = vmatprep.subr.bf16.mxu1 (!%p155_p10), %v1431_v44  ;;  %vm598_vm9 = vcmask (!%p155_p10), 162944   ;;  %vm2500_vm10 = vcmask (!%p155_p10), 162945   ;;  %vm600_vm11 = vcmask (!%p155_p10), 155776   ;;  %vm697_vm12 = vcmask (!%p155_p10), 195744  }
  0x16   : > { %s1628_s29 = smov (!%p155_p10), 28   ;;  %1434 = vmatpush3.bf16.msra.mxu0 (!%p155_p10), %v1431_v44  ;;  %1442 = vmatpush3.bf16.msra.mxu1 (!%p155_p10), %v1431_v44  ;;  %vm2499_vm13 = vcmask (!%p155_p10), 195746   ;;  %vm699_vm14 = vcmask (!%p155_p10), 189600   ;;  %vm772_vm15 = vcmask (!%p155_p10), 228544  }
  0x17   : > { %1436 = vmatprep.subr.bf16.mxu0 (!%p155_p10), %v1435_v49  ;;  %1440 = vmatprep.subr.bf16.mxu1 (!%p155_p10), %v1435_v49 }
  0x18   : > { %s179_s4 = scalar_select %p178_p12, %s1608_s16, 1 }
  0x1a   : > { %s1445_s6 = smul.u32 432, %s179_s4  ;;  %s1629_s4 = smov 32   ;;  %1438 = vmatpush3.bf16.msra.mxu0 %v1435_v49  ;;  %1443 = vmatpush3.bf16.msra.mxu1 %v1435_v49 }
  0x1b   : > { %1405 = vmatprep.subr.msk.mxu0 %vm1065_vm4, %v1008_v52  ;;  %1441 = vmatprep.subr.msk.mxu1 %vm1065_vm4, %v1008_v52 }
  0x1c   : > { %s182_s9 = scalar_lea.vmem %s2494_s0, %s1445_s6 }
  0x1d   : > { %s1729_s10 = scalar_lea.vmem %s182_s9, %s1349_s5 }
  0x1e   : > { %v1732_v0 = vld [vmem:[%s1729_s10 + $0x10] sm:$0x3]  ;;  %v1735_v1 = vld [vmem:[%s1729_s10] sm:$0xff]  ;;  %v1738_v2 = vld [vmem:[%s1729_s10 + $0x18] sm:$0xff]  ;;  %1406 = vmatpush3.msk.msra.mxu0 %vm1065_vm4, %v1008_v52  ;;  %1444 = vmatpush3.msk.msra.mxu1 %vm1065_vm4, %v1008_v52  ;;  %vm961_vm4 = vcmask 294146  }
  0x1f   : > { %262 = vrot.lane.b32.xlu1 %v1732_v0, %s1622_s11  ;;  %258 = vrot.lane.b32.xlu0 %v1735_v1, %s1622_s11  ;;  %v188_v3 = vld [vmem:[%s1729_s10 + $0x8] sm:$0xff]  ;;  %218 = vst.msk [vmem:[#allocation2] sm:$0xff] %vm217_vm0, %v1735_v1  ;;  %220 = vst.msk [vmem:[#allocation2 + $0x10] sm:$0xff] %vm217_vm0, %v1738_v2  ;;  %v1750_v4 = vld [vmem:[%s1729_s10 + $0x20] sm:$0xff] }
  0x20   : > { %v1753_v5 = vld [vmem:[%s1729_s10 + $0x38] sm:$0xff]  ;;  %v1756_v6 = vld [vmem:[%s1729_s10 + $0x30] sm:$0xff]  ;;  %219 = vst.msk [vmem:[#allocation2 + $0x8] sm:$0xff] %vm217_vm0, %v188_v3  ;;  %v1760_v7 = vld [vmem:[%s1729_s10 + $0x48] sm:$0xff] }
  0x21   : > { %221 = vst.msk [vmem:[#allocation2 + $0x18] sm:$0xff] %vm217_vm0, %v1750_v4  ;;  %222 = vst.msk [vmem:[#allocation2 + $0x20] sm:$0xff] %vm217_vm0, %v1756_v6  ;;  %v1769_v8 = vld [vmem:[%s1729_s10 + $0x50] sm:$0xff]  ;;  %v1772_v9 = vld [vmem:[%s1729_s10 + $0x68] sm:$0xff] }
  0x22   : > { %223 = vst.msk [vmem:[#allocation2 + $0x28] sm:$0xff] %vm217_vm0, %v1753_v5  ;;  %v1775_v10 = vld [vmem:[%s1729_s10 + $0x60] sm:$0xff]  ;;  %224 = vst.msk [vmem:[#allocation2 + $0x30] sm:$0xff] %vm217_vm0, %v1760_v7  ;;  %v1783_v11 = vld [vmem:[%s1729_s10 + $0x78] sm:$0xff] }
  0x23   : > { %264 = vrot.lane.b32.xlu1 %v1738_v2, %s1622_s11  ;;  %260 = vrot.lane.b32.xlu0 %v188_v3, %s1622_s11  ;;  %225 = vst.msk [vmem:[#allocation2 + $0x38] sm:$0xff] %vm217_vm0, %v1769_v8  ;;  %226 = vst.msk [vmem:[#allocation2 + $0x40] sm:$0xff] %vm217_vm0, %v1775_v10  ;;  %v1792_v12 = vld [vmem:[%s1729_s10 + $0x28] sm:$0x3]  ;;  %v1795_v13 = vld [vmem:[%s1729_s10 + $0x80] sm:$0xff] }
  0x24   : > { %227 = vst.msk [vmem:[#allocation2 + $0x48] sm:$0xff] %vm217_vm0, %v1772_v9  ;;  %v1798_v14 = vld [vmem:[%s1729_s10 + $0x98] sm:$0xff]  ;;  %228 = vst.msk [vmem:[#allocation2 + $0x50] sm:$0xff] %vm217_vm0, %v1783_v11  ;;  %v1803_v15 = vld [vmem:[%s1729_s10 + $0x90] sm:$0xff] }
  0x25   : > { %v1806_v16 = vld [vmem:[%s1729_s10 + $0xa8] sm:$0xff]  ;;  %229 = vst.msk [vmem:[#allocation2 + $0x58] sm:$0xff] %vm217_vm0, %v1795_v13  ;;  %231 = vst.msk [vmem:[#allocation2 + $0x68] sm:$0xff] %vm217_vm0, %v1798_v14  ;;  %v1813_v17 = vld [vmem:[%s1729_s10 + $0xb0] sm:$0xff] }
  0x26   : > { %230 = vst.msk [vmem:[#allocation2 + $0x60] sm:$0xff] %vm217_vm0, %v1803_v15  ;;  %232 = vst.msk [vmem:[#allocation2 + $0x70] sm:$0xff] %vm217_vm0, %v1806_v16  ;;  %v1830_v18 = vld [vmem:[%s1729_s10 + $0x40] sm:$0x3]  ;;  %v1837_v19 = vld [vmem:[%s1729_s10 + $0x58] sm:$0x3] }
  0x27   : > { %268 = vrot.lane.b32.xlu1 %v1792_v12, %s1622_s11  ;;  %266 = vrot.lane.b32.xlu0 %v1750_v4, %s1622_s11  ;;  %233 = vst.msk [vmem:[#allocation2 + $0x78] sm:$0xff] %vm217_vm0, %v1813_v17  ;;  %v1848_v20 = vld [vmem:[%s1729_s10 + $0x70] sm:$0x3]  ;;  %v1855_v21 = vld [vmem:[%s1729_s10 + $0x88] sm:$0x3]  ;;  %vm864_vm0 = vcmask 261344  }
  0x28   : > { %v1866_v22 = vld [vmem:[%s1729_s10 + $0xa0] sm:$0x3]  ;;  %v1873_v23 = vld [vmem:[%s1729_s10 + $0xb8] sm:$0x3] }
  0x2b   : > { %272 = vrot.lane.b32.xlu1 %v1753_v5, %s1622_s11  ;;  %270 = vrot.lane.b32.xlu0 %v1756_v6, %s1622_s11 }
  0x2f   : > { %276 = vrot.lane.b32.xlu1 %v1760_v7, %s1622_s11  ;;  %274 = vrot.lane.b32.xlu0 %v1830_v18, %s1622_s11 }
  0x33   : > { %280 = vrot.lane.b32.xlu1 %v1837_v19, %s1622_s11  ;;  %278 = vrot.lane.b32.xlu0 %v1769_v8, %s1622_s11 }
  0x37   : > { %284 = vrot.lane.b32.xlu1 %v1772_v9, %s1622_s11  ;;  %282 = vrot.lane.b32.xlu0 %v1775_v10, %s1622_s11 }
  0x3b   : > { %288 = vrot.lane.b32.xlu1 %v1783_v11, %s1622_s11  ;;  %286 = vrot.lane.b32.xlu0 %v1848_v20, %s1622_s11 }
  0x3f   : > { %292 = vrot.lane.b32.xlu1 %v1855_v21, %s1622_s11  ;;  %290 = vrot.lane.b32.xlu0 %v1795_v13, %s1622_s11 }
  0x43   : > { %296 = vrot.lane.b32.xlu1 %v1798_v14, %s1622_s11  ;;  %294 = vrot.lane.b32.xlu0 %v1803_v15, %s1622_s11 }
  0x47   : > { %300 = vrot.lane.b32.xlu1 %v1806_v16, %s1622_s11  ;;  %298 = vrot.lane.b32.xlu0 %v1866_v22, %s1622_s11 }
  0x4b   : > { %304 = vrot.lane.b32.xlu1 %v1873_v23, %s1622_s11  ;;  %302 = vrot.lane.b32.xlu0 %v1813_v17, %s1622_s11 }
  0x4f   : > { %359 = vrot.lane.b32.xlu1 %v188_v3, %s1623_s20  ;;  %357 = vrot.lane.b32.xlu0 %v1735_v1, %s1623_s20 }
  0x53   : > { %381 = vrot.lane.b32.xlu1 %v1775_v10, %s1623_s20  ;;  %361 = vrot.lane.b32.xlu0 %v1732_v0, %s1623_s20 }
  0x57   : > { %385 = vrot.lane.b32.xlu1 %v1848_v20, %s1623_s20  ;;  %383 = vrot.lane.b32.xlu0 %v1772_v9, %s1623_s20 }
  0x5b   : > { %460 = vrot.lane.b32.xlu1 %v1750_v4, %s1624_s21  ;;  %458 = vrot.lane.b32.xlu0 %v1738_v2, %s1624_s21 }
  0x5f   : > { %476 = vrot.lane.b32.xlu1 %v1795_v13, %s1624_s21  ;;  %474 = vrot.lane.b32.xlu0 %v1783_v11, %s1624_s21 }
  0x63   : > { %526 = vrot.lane.b32.xlu1 %v1750_v4, %s1625_s24  ;;  %524 = vrot.lane.b32.xlu0 %v1738_v2, %s1625_s24 }
  0x67   : > { %548 = vrot.lane.b32.xlu1 %v1783_v11, %s1625_s24  ;;  %528 = vrot.lane.b32.xlu0 %v1792_v12, %s1625_s24 }
  0x6b   : > { %552 = vrot.lane.b32.xlu1 %v1855_v21, %s1625_s24  ;;  %550 = vrot.lane.b32.xlu0 %v1795_v13, %s1625_s24 }
  0x6f   : > { %625 = vrot.lane.b32.xlu1 %v1750_v4, %s1626_s27  ;;  %623 = vrot.lane.b32.xlu0 %v1738_v2, %s1626_s27 }
  0x73   : > { %647 = vrot.lane.b32.xlu1 %v1783_v11, %s1626_s27  ;;  %627 = vrot.lane.b32.xlu0 %v1792_v12, %s1626_s27 }
  0x77   : > { %651 = vrot.lane.b32.xlu1 %v1855_v21, %s1626_s27  ;;  %649 = vrot.lane.b32.xlu0 %v1795_v13, %s1626_s27 }
  0x7b   : > { %365 = vrot.lane.b32.xlu1 %v1750_v4, %s1623_s20  ;;  %363 = vrot.lane.b32.xlu0 %v1738_v2, %s1623_s20 }
  0x7f   : > { %387 = vrot.lane.b32.xlu1 %v1783_v11, %s1623_s20  ;;  %367 = vrot.lane.b32.xlu0 %v1792_v12, %s1623_s20 }
  0x83   : > { %391 = vrot.lane.b32.xlu1 %v1855_v21, %s1623_s20  ;;  %389 = vrot.lane.b32.xlu0 %v1795_v13, %s1623_s20 }
  0x87   : > { %726 = vrot.lane.b32.xlu1 %v1753_v5, %s1627_s28  ;;  %724 = vrot.lane.b32.xlu0 %v1756_v6, %s1627_s28 }
  0x8b   : > { %742 = vrot.lane.b32.xlu1 %v1798_v14, %s1627_s28  ;;  %740 = vrot.lane.b32.xlu0 %v1803_v15, %s1627_s28 }
  0x8f   : > { %464 = vrot.lane.b32.xlu1 %v1753_v5, %s1624_s21  ;;  %462 = vrot.lane.b32.xlu0 %v1756_v6, %s1624_s21 }
  0x91   : > { %v263_v24 = vpop.permute.xlu1 %262  ;;  %v259_v25 = vpop.permute.xlu0 %258 }
  0x92   : > { %335 = vst.msk [vmem:[#allocation2 + $0xf] sm:$0x1] %vm334_vm1, %v263_v24 }
  0x93   : > { %331 = vst.msk [vmem:[#allocation2 - $0x1] sm:$0xfe] %vm330_vm2, %v259_v25  ;;  %480 = vrot.lane.b32.xlu1 %v1798_v14, %s1624_s21  ;;  %478 = vrot.lane.b32.xlu0 %v1803_v15, %s1624_s21 }
  0x95   : > { %v265_v26 = vpop.permute.xlu1 %264  ;;  %v261_v27 = vpop.permute.xlu0 %260 }
  0x96   : > { %336 = vst.msk [vmem:[#allocation2 + $0xf] sm:$0xfe] %vm330_vm2, %v265_v26 }
  0x97   : > { %333 = vst.msk [vmem:[#allocation2 + $0x7] sm:$0xff] %vm332_vm3, %v261_v27  ;;  %792 = vrot.lane.b32.xlu1 %v1753_v5, %s1628_s29  ;;  %790 = vrot.lane.b32.xlu0 %v1756_v6, %s1628_s29 }
  0x99   : > { %v269_v28 = vpop.permute.xlu1 %268  ;;  %v267_v29 = vpop.permute.xlu0 %266 }
  0x9a   : > { %338 = vst.msk [vmem:[#allocation2 + $0x1f] sm:$0x1] %vm334_vm1, %v269_v28 }
  0x9b   : > { %337 = vst.msk [vmem:[#allocation2 + $0x17] sm:$0xff] %vm332_vm3, %v267_v29  ;;  %816 = vrot.lane.b32.xlu1 %v1798_v14, %s1628_s29  ;;  %814 = vrot.lane.b32.xlu0 %v1803_v15, %s1628_s29 }
  0x9d   : > { %v273_v30 = vpop.permute.xlu1 %272  ;;  %v271_v31 = vpop.permute.xlu0 %270 }
  0x9e   : > { %340 = vst.msk [vmem:[#allocation2 + $0x27] sm:$0xff] %vm332_vm3, %v273_v30 }
  0x9f   : > { %339 = vst.msk [vmem:[#allocation2 + $0x1f] sm:$0xfe] %vm330_vm2, %v271_v31  ;;  %532 = vrot.lane.b32.xlu1 %v1753_v5, %s1625_s24  ;;  %530 = vrot.lane.b32.xlu0 %v1756_v6, %s1625_s24 }
  0xa1   : > { %v277_v32 = vpop.permute.xlu1 %276  ;;  %v275_v33 = vpop.permute.xlu0 %274 }
  0xa2   : > { %342 = vst.msk [vmem:[#allocation2 + $0x2f] sm:$0xfe] %vm330_vm2, %v277_v32 }
  0xa3   : > { %341 = vst.msk [vmem:[#allocation2 + $0x2f] sm:$0x1] %vm334_vm1, %v275_v33  ;;  %554 = vrot.lane.b32.xlu1 %v1803_v15, %s1625_s24  ;;  %534 = vrot.lane.b32.xlu0 %v1830_v18, %s1625_s24 }
  0xa5   : > { %v281_v34 = vpop.permute.xlu1 %280  ;;  %v279_v35 = vpop.permute.xlu0 %278 }
  0xa6   : > { %344 = vst.msk [vmem:[#allocation2 + $0x3f] sm:$0x1] %vm334_vm1, %v281_v34 }
  0xa7   : > { %343 = vst.msk [vmem:[#allocation2 + $0x37] sm:$0xff] %vm332_vm3, %v279_v35  ;;  %558 = vrot.lane.b32.xlu1 %v1866_v22, %s1625_s24  ;;  %556 = vrot.lane.b32.xlu0 %v1798_v14, %s1625_s24 }
  0xa9   : > { %v285_v36 = vpop.permute.xlu1 %284  ;;  %v283_v37 = vpop.permute.xlu0 %282 }
  0xaa   : > { %346 = vst.msk [vmem:[#allocation2 + $0x47] sm:$0xff] %vm332_vm3, %v285_v36 }
  0xab   : > { %345 = vst.msk [vmem:[#allocation2 + $0x3f] sm:$0xfe] %vm330_vm2, %v283_v37  ;;  %818 = vrot.lane.b32.xlu1 %v1866_v22, %s1628_s29  ;;  %794 = vrot.lane.b32.xlu0 %v1830_v18, %s1628_s29 }
  0xad   : > { %v289_v38 = vpop.permute.xlu1 %288  ;;  %v287_v39 = vpop.permute.xlu0 %286 }
  0xae   : > { %348 = vst.msk [vmem:[#allocation2 + $0x4f] sm:$0xfe] %vm330_vm2, %v289_v38 }
  0xaf   : > { %347 = vst.msk [vmem:[#allocation2 + $0x4f] sm:$0x1] %vm334_vm1, %v287_v39  ;;  %891 = vrot.lane.b32.xlu1 %v1753_v5, %s1629_s4  ;;  %889 = vrot.lane.b32.xlu0 %v1756_v6, %s1629_s4 }
  0xb1   : > { %v293_v40 = vpop.permute.xlu1 %292  ;;  %v291_v41 = vpop.permute.xlu0 %290 }
  0xb2   : > { %350 = vst.msk [vmem:[#allocation2 + $0x5f] sm:$0x1] %vm334_vm1, %v293_v40 }
  0xb3   : > { %349 = vst.msk [vmem:[#allocation2 + $0x57] sm:$0xff] %vm332_vm3, %v291_v41  ;;  %915 = vrot.lane.b32.xlu1 %v1798_v14, %s1629_s4  ;;  %913 = vrot.lane.b32.xlu0 %v1803_v15, %s1629_s4 }
  0xb5   : > { %v297_v45 = vpop.permute.xlu1 %296  ;;  %v295_v46 = vpop.permute.xlu0 %294 }
  0xb6   : > { %352 = vst.msk [vmem:[#allocation2 + $0x67] sm:$0xff] %vm332_vm3, %v297_v45 }
  0xb7   : > { %351 = vst.msk [vmem:[#allocation2 + $0x5f] sm:$0xfe] %vm330_vm2, %v295_v46  ;;  %631 = vrot.lane.b32.xlu1 %v1753_v5, %s1626_s27  ;;  %629 = vrot.lane.b32.xlu0 %v1756_v6, %s1626_s27 }
  0xb9   : > { %v301_v50 = vpop.permute.xlu1 %300  ;;  %v299_v51 = vpop.permute.xlu0 %298 }
  0xba   : > { %354 = vst.msk [vmem:[#allocation2 + $0x6f] sm:$0xfe] %vm330_vm2, %v301_v50  ;;  %vm2498_vm2 = vcmask 254176  }
  0xbb   : > { %353 = vst.msk [vmem:[#allocation2 + $0x6f] sm:$0x1] %vm334_vm1, %v299_v51  ;;  %653 = vrot.lane.b32.xlu1 %v1803_v15, %s1626_s27  ;;  %633 = vrot.lane.b32.xlu0 %v1830_v18, %s1626_s27 }
  0xbd   : > { %v305_v53 = vpop.permute.xlu1 %304  ;;  %v303_v54 = vpop.permute.xlu0 %302 }
  0xbe   : > { %356 = vst.msk [vmem:[#allocation2 + $0x7f] sm:$0x1] %vm334_vm1, %v305_v53  ;;  %vm2501_vm1 = vcmask 261345  }
  0xbf   : > { %355 = vst.msk [vmem:[#allocation2 + $0x77] sm:$0xff] %vm332_vm3, %v303_v54  ;;  %657 = vrot.lane.b32.xlu1 %v1866_v22, %s1626_s27  ;;  %655 = vrot.lane.b32.xlu0 %v1798_v14, %s1626_s27  ;;  %vm963_vm3 = vcmask 294144  }
  0xc1   : > { %v360_v55 = vpop.permute.xlu1 %359  ;;  %v358_v56 = vpop.permute.xlu0 %357 }
  0xc2   : > { %432 = vst.msk [vmem:[#allocation2 + $0x6] sm:$0xff] %vm431_vm5, %v360_v55 }
  0xc3   : > { %430 = vst.msk [vmem:[#allocation2 - $0x2] sm:$0xfc] %vm429_vm6, %v358_v56  ;;  %917 = vrot.lane.b32.xlu1 %v1866_v22, %s1629_s4  ;;  %893 = vrot.lane.b32.xlu0 %v1830_v18, %s1629_s4 }
  0xc5   : > { %v382_v57 = vpop.permute.xlu1 %381  ;;  %v362_v58 = vpop.permute.xlu0 %361 }
  0xc6   : > { %444 = vst.msk [vmem:[#allocation2 + $0x3e] sm:$0xfc] %vm429_vm6, %v382_v57 }
  0xc7   : > { %434 = vst.msk [vmem:[#allocation2 + $0xe] sm:$0x3] %vm433_vm7, %v362_v58  ;;  %371 = vrot.lane.b32.xlu1 %v1753_v5, %s1623_s20  ;;  %369 = vrot.lane.b32.xlu0 %v1756_v6, %s1623_s20 }
  0xc9   : > { %v386_v59 = vpop.permute.xlu1 %385  ;;  %v384_v60 = vpop.permute.xlu0 %383 }
  0xca   : > { %446 = vst.msk [vmem:[#allocation2 + $0x4e] sm:$0x3] %vm433_vm7, %v386_v59 }
  0xcb   : > { %445 = vst.msk [vmem:[#allocation2 + $0x46] sm:$0xff] %vm431_vm5, %v384_v60  ;;  %393 = vrot.lane.b32.xlu1 %v1803_v15, %s1623_s20  ;;  %373 = vrot.lane.b32.xlu0 %v1830_v18, %s1623_s20 }
  0xcd   : > { %v461_v61 = vpop.permute.xlu1 %460  ;;  %v459_v62 = vpop.permute.xlu0 %458 }
  0xce   : > { %508 = vst.msk [vmem:[#allocation2 + $0x8] sm:$0xff] %vm506_vm8, %v461_v61  ;;  %507 = vst.msk [vmem:[#allocation2] sm:$0xff] %vm506_vm8, %v459_v62 }
  0xcf   : > { %397 = vrot.lane.b32.xlu1 %v1866_v22, %s1623_s20  ;;  %395 = vrot.lane.b32.xlu0 %v1798_v14, %s1623_s20 }
  0xd1   : > { %v477_v63 = vpop.permute.xlu1 %476  ;;  %v475_v0 = vpop.permute.xlu0 %474 }
  0xd2   : > { %516 = vst.msk [vmem:[#allocation2 + $0x48] sm:$0xff] %vm506_vm8, %v477_v63  ;;  %515 = vst.msk [vmem:[#allocation2 + $0x40] sm:$0xff] %vm506_vm8, %v475_v0  ;;  %v213_v63 = vld [vmem:[%s1729_s10 + $0xd0] sm:$0x3] }
  0xd3   : > { %730 = vrot.lane.b32.xlu1 %v1769_v8, %s1627_s28  ;;  %728 = vrot.lane.b32.xlu0 %v1760_v7, %s1627_s28 }
  0xd5   : > { %v527_v1 = vpop.permute.xlu1 %526  ;;  %v525_v2 = vpop.permute.xlu0 %524 }
  0xd6   : > { %599 = vst.msk [vmem:[#allocation2 + $0x7] sm:$0xff] %vm598_vm9, %v527_v1 }
  0xd7   : > { %597 = vst.msk [vmem:[#allocation2 - $0x1] sm:$0xfe] %vm2500_vm10, %v525_v2  ;;  %746 = vrot.lane.b32.xlu1 %v1813_v17, %s1627_s28  ;;  %744 = vrot.lane.b32.xlu0 %v1806_v16, %s1627_s28 }
  0xd9   : > { %v549_v3 = vpop.permute.xlu1 %548  ;;  %v529_v4 = vpop.permute.xlu0 %528 }
  0xda   : > { %611 = vst.msk [vmem:[#allocation2 + $0x3f] sm:$0xfe] %vm2500_vm10, %v549_v3 }
  0xdb   : > { %601 = vst.msk [vmem:[#allocation2 + $0xf] sm:$0x1] %vm600_vm11, %v529_v4  ;;  %468 = vrot.lane.b32.xlu1 %v1769_v8, %s1624_s21  ;;  %466 = vrot.lane.b32.xlu0 %v1760_v7, %s1624_s21 }
  0xdd   : > { %v553_v5 = vpop.permute.xlu1 %552  ;;  %v551_v6 = vpop.permute.xlu0 %550 }
  0xde   : > { %613 = vst.msk [vmem:[#allocation2 + $0x4f] sm:$0x1] %vm600_vm11, %v553_v5 }
  0xdf   : > { %612 = vst.msk [vmem:[#allocation2 + $0x47] sm:$0xff] %vm598_vm9, %v551_v6  ;;  %484 = vrot.lane.b32.xlu1 %v1813_v17, %s1624_s21  ;;  %482 = vrot.lane.b32.xlu0 %v1806_v16, %s1624_s21 }
  0xe1   : > { %v626_v12 = vpop.permute.xlu1 %625  ;;  %v624_v14 = vpop.permute.xlu0 %623 }
  0xe2   : > { %698 = vst.msk [vmem:[#allocation2 + $0x6] sm:$0xff] %vm697_vm12, %v626_v12 }
  0xe3   : > { %696 = vst.msk [vmem:[#allocation2 - $0x2] sm:$0xfc] %vm2499_vm13, %v624_v14  ;;  %798 = vrot.lane.b32.xlu1 %v1769_v8, %s1628_s29  ;;  %796 = vrot.lane.b32.xlu0 %v1760_v7, %s1628_s29 }
  0xe5   : > { %v648_v15 = vpop.permute.xlu1 %647  ;;  %v628_v18 = vpop.permute.xlu0 %627 }
  0xe6   : > { %710 = vst.msk [vmem:[#allocation2 + $0x3e] sm:$0xfc] %vm2499_vm13, %v648_v15 }
  0xe7   : > { %700 = vst.msk [vmem:[#allocation2 + $0xe] sm:$0x3] %vm699_vm14, %v628_v18  ;;  %822 = vrot.lane.b32.xlu1 %v1813_v17, %s1628_s29  ;;  %820 = vrot.lane.b32.xlu0 %v1806_v16, %s1628_s29 }
  0xe9   : > { %v652_v22 = vpop.permute.xlu1 %651  ;;  %v650_v24 = vpop.permute.xlu0 %649 }
  0xea   : > { %712 = vst.msk [vmem:[#allocation2 + $0x4e] sm:$0x3] %vm699_vm14, %v652_v22 }
  0xeb   : > { %711 = vst.msk [vmem:[#allocation2 + $0x46] sm:$0xff] %vm697_vm12, %v650_v24  ;;  %538 = vrot.lane.b32.xlu1 %v1769_v8, %s1625_s24  ;;  %536 = vrot.lane.b32.xlu0 %v1760_v7, %s1625_s24 }
  0xed   : > { %v366_v25 = vpop.permute.xlu1 %365  ;;  %v364_v26 = vpop.permute.xlu0 %363 }
  0xee   : > { %436 = vst.msk [vmem:[#allocation2 + $0x16] sm:$0xff] %vm431_vm5, %v366_v25 }
  0xef   : > { %435 = vst.msk [vmem:[#allocation2 + $0xe] sm:$0xfc] %vm429_vm6, %v364_v26  ;;  %560 = vrot.lane.b32.xlu1 %v1806_v16, %s1625_s24  ;;  %540 = vrot.lane.b32.xlu0 %v1837_v19, %s1625_s24 }
  0xf1   : > { %v388_v27 = vpop.permute.xlu1 %387  ;;  %v368_v28 = vpop.permute.xlu0 %367 }
  0xf2   : > { %447 = vst.msk [vmem:[#allocation2 + $0x4e] sm:$0xfc] %vm429_vm6, %v388_v27 }
  0xf3   : > { %437 = vst.msk [vmem:[#allocation2 + $0x1e] sm:$0x3] %vm433_vm7, %v368_v28  ;;  %564 = vrot.lane.b32.xlu1 %v1873_v23, %s1625_s24  ;;  %562 = vrot.lane.b32.xlu0 %v1813_v17, %s1625_s24 }
  0xf5   : > { %v392_v29 = vpop.permute.xlu1 %391  ;;  %v390_v30 = vpop.permute.xlu0 %389 }
  0xf6   : > { %449 = vst.msk [vmem:[#allocation2 + $0x5e] sm:$0x3] %vm433_vm7, %v392_v29 }
  0xf7   : > { %448 = vst.msk [vmem:[#allocation2 + $0x56] sm:$0xff] %vm431_vm5, %v390_v30  ;;  %824 = vrot.lane.b32.xlu1 %v1873_v23, %s1628_s29  ;;  %800 = vrot.lane.b32.xlu0 %v1837_v19, %s1628_s29  ;;  %v215_v30 = vld [vmem:[%s1729_s10 + $0xe0] sm:$0xff] }
  0xf9   : > { %v727_v31 = vpop.permute.xlu1 %726  ;;  %v725_v32 = vpop.permute.xlu0 %724 }
  0xfa   : > { %774 = vst.msk [vmem:[#allocation2 + $0x8] sm:$0xff] %vm772_vm15, %v727_v31  ;;  %773 = vst.msk [vmem:[#allocation2] sm:$0xff] %vm772_vm15, %v725_v32  ;;  %v214_v31 = vld [vmem:[%s1729_s10 + $0xd8] sm:$0xff] }
  0xfb   : > { %897 = vrot.lane.b32.xlu1 %v1769_v8, %s1629_s4  ;;  %895 = vrot.lane.b32.xlu0 %v1760_v7, %s1629_s4 }
  0xfd   : > { %v743_v33 = vpop.permute.xlu1 %742  ;;  %v741_v34 = vpop.permute.xlu0 %740 }
  0xfe   : > { %782 = vst.msk [vmem:[#allocation2 + $0x48] sm:$0xff] %vm772_vm15, %v743_v33  ;;  %781 = vst.msk [vmem:[#allocation2 + $0x40] sm:$0xff] %vm772_vm15, %v741_v34 }
  0xff   : > { %921 = vrot.lane.b32.xlu1 %v1813_v17, %s1629_s4  ;;  %919 = vrot.lane.b32.xlu0 %v1806_v16, %s1629_s4 }
 0x101   : > { %v465_v35 = vpop.permute.xlu1 %464  ;;  %v463_v36 = vpop.permute.xlu0 %462 }
 0x102   : > { %510 = vst.msk [vmem:[#allocation2 + $0x18] sm:$0xff] %vm506_vm8, %v465_v35  ;;  %509 = vst.msk [vmem:[#allocation2 + $0x10] sm:$0xff] %vm506_vm8, %v463_v36 }
 0x103   : > { %637 = vrot.lane.b32.xlu1 %v1769_v8, %s1626_s27  ;;  %635 = vrot.lane.b32.xlu0 %v1760_v7, %s1626_s27 }
 0x105   : > { %v481_v37 = vpop.permute.xlu1 %480  ;;  %v479_v38 = vpop.permute.xlu0 %478 }
 0x106   : > { %518 = vst.msk [vmem:[#allocation2 + $0x58] sm:$0xff] %vm506_vm8, %v481_v37  ;;  %517 = vst.msk [vmem:[#allocation2 + $0x50] sm:$0xff] %vm506_vm8, %v479_v38  ;;  %v216_v37 = vld [vmem:[%s1729_s10 + $0xe8] sm:$0x3] }
 0x107   : > { %659 = vrot.lane.b32.xlu1 %v1806_v16, %s1626_s27  ;;  %639 = vrot.lane.b32.xlu0 %v1837_v19, %s1626_s27 }
 0x109   : > { %v793_v39 = vpop.permute.xlu1 %792  ;;  %v791_v40 = vpop.permute.xlu0 %790 }
 0x10a   : > { %865 = vst.msk [vmem:[#allocation2 + $0x7] sm:$0xff] %vm864_vm0, %v793_v39 }
 0x10b   : > { %863 = vst.msk [vmem:[#allocation2 - $0x1] sm:$0xfe] %vm2501_vm1, %v791_v40  ;;  %663 = vrot.lane.b32.xlu1 %v1873_v23, %s1626_s27  ;;  %661 = vrot.lane.b32.xlu0 %v1813_v17, %s1626_s27 }
 0x10d   : > { %v817_v41 = vpop.permute.xlu1 %816  ;;  %v815_v42 = vpop.permute.xlu0 %814 }
 0x10e   : > { %878 = vst.msk [vmem:[#allocation2 + $0x47] sm:$0xff] %vm864_vm0, %v817_v41 }
 0x10f   : > { %877 = vst.msk [vmem:[#allocation2 + $0x3f] sm:$0xfe] %vm2501_vm1, %v815_v42  ;;  %923 = vrot.lane.b32.xlu1 %v1873_v23, %s1629_s4  ;;  %899 = vrot.lane.b32.xlu0 %v1837_v19, %s1629_s4 }
 0x111   : > { %v533_v43 = vpop.permute.xlu1 %532  ;;  %v531_v44 = vpop.permute.xlu0 %530 }
 0x112   : > { %603 = vst.msk [vmem:[#allocation2 + $0x17] sm:$0xff] %vm598_vm9, %v533_v43 }
 0x113   : > { %602 = vst.msk [vmem:[#allocation2 + $0xf] sm:$0xfe] %vm2500_vm10, %v531_v44  ;;  %377 = vrot.lane.b32.xlu1 %v1769_v8, %s1623_s20  ;;  %375 = vrot.lane.b32.xlu0 %v1760_v7, %s1623_s20 }
 0x115   : > { %v555_v45 = vpop.permute.xlu1 %554  ;;  %v535_v46 = vpop.permute.xlu0 %534 }
 0x116   : > { %614 = vst.msk [vmem:[#allocation2 + $0x4f] sm:$0xfe] %vm2500_vm10, %v555_v45 }
 0x117   : > { %604 = vst.msk [vmem:[#allocation2 + $0x1f] sm:$0x1] %vm600_vm11, %v535_v46  ;;  %399 = vrot.lane.b32.xlu1 %v1806_v16, %s1623_s20  ;;  %379 = vrot.lane.b32.xlu0 %v1837_v19, %s1623_s20  ;;  %v2178_v16 = vld [vmem:[%s1729_s10 + $0xc8] sm:$0xff]  ;;  %v2181_v19 = vld [vmem:[%s1729_s10 + $0xc0] sm:$0xff]  ;;  %s175_s10 = sand.u32 1, %s1596_s13  }
 0x118   : > { %s2441_s7 = scalar_lea.sflag [#allocation4], %s175_s10 }
 0x119   : > { %v559_v47 = vpop.permute.xlu1 %558  ;;  %v557_v48 = vpop.permute.xlu0 %556 }
 0x11a   : > { %616 = vst.msk [vmem:[#allocation2 + $0x5f] sm:$0x1] %vm600_vm11, %v559_v47 }
 0x11b   : > { %615 = vst.msk [vmem:[#allocation2 + $0x57] sm:$0xff] %vm598_vm9, %v557_v48  ;;  %403 = vrot.lane.b32.xlu1 %v1873_v23, %s1623_s20  ;;  %401 = vrot.lane.b32.xlu0 %v1813_v17, %s1623_s20 }
 0x11d   : > { %v819_v7 = vpop.permute.xlu1 %818  ;;  %v795_v8 = vpop.permute.xlu0 %794 }
 0x11e   : > { %879 = vst.msk [vmem:[#allocation2 + $0x4f] sm:$0x1] %vm2498_vm2, %v819_v7  ;;  %867 = vst.msk [vmem:[#allocation2 + $0xf] sm:$0x1] %vm2498_vm2, %v795_v8  ;;  %vm1016_vm2 = vcmask 293888  }
 0x11f   : > { %734 = vrot.lane.b32.xlu1 %v1772_v9, %s1627_s28  ;;  %732 = vrot.lane.b32.xlu0 %v1775_v10, %s1627_s28 }
 0x121   : > { %v892_v17 = vpop.permute.xlu1 %891  ;;  %v890_v23 = vpop.permute.xlu0 %889 }
 0x122   : > { %964 = vst.msk [vmem:[#allocation2 + $0x6] sm:$0xff] %vm963_vm3, %v892_v17 }
 0x123   : > { %962 = vst.msk [vmem:[#allocation2 - $0x2] sm:$0xfc] %vm961_vm4, %v890_v23  ;;  %750 = vrot.lane.b32.xlu1 %v2178_v16, %s1627_s28  ;;  %748 = vrot.lane.b32.xlu0 %v2181_v19, %s1627_s28 }
 0x125   : > { %v916_v49 = vpop.permute.xlu1 %915  ;;  %v914_v50 = vpop.permute.xlu0 %913 }
 0x126   : > { %977 = vst.msk [vmem:[#allocation2 + $0x46] sm:$0xff] %vm963_vm3, %v916_v49 }
 0x127   : > { %976 = vst.msk [vmem:[#allocation2 + $0x3e] sm:$0xfc] %vm961_vm4, %v914_v50  ;;  %472 = vrot.lane.b32.xlu1 %v1772_v9, %s1624_s21  ;;  %470 = vrot.lane.b32.xlu0 %v1775_v10, %s1624_s21 }
 0x129   : > { %v632_v51 = vpop.permute.xlu1 %631  ;;  %v630_v52 = vpop.permute.xlu0 %629 }
 0x12a   : > { %v988_v53 = vld [vmem:[#allocation2] sm:$0xff]  ;;  %702 = vst.msk [vmem:[#allocation2 + $0x16] sm:$0xff] %vm697_vm12, %v632_v51 }
 0x12b   : > { %701 = vst.msk [vmem:[#allocation2 + $0xe] sm:$0xfc] %vm2499_vm13, %v630_v52  ;;  %1407 = vmatprep.mubr.msk.f32.mxu0 %vm1016_vm2, %v988_v53  ;;  %488 = vrot.lane.b32.xlu1 %v2178_v16, %s1624_s21 }
 0x12c   : > { %486 = vrot.lane.b32.xlu0 %v2181_v19, %s1624_s21  ;;  %s1630_s21 = smov [#allocation3]  }
 0x12d   : > { %v654_v54 = vpop.permute.xlu1 %653  ;;  %v634_v55 = vpop.permute.xlu0 %633 }
 0x12e   : > { %v996_v56 = vld [vmem:[#allocation2 + $0x40] sm:$0xff]  ;;  %713 = vst.msk [vmem:[#allocation2 + $0x4e] sm:$0xfc] %vm2499_vm13, %v654_v54  ;;  %vm965_vm13 = vcmask 288000  }
 0x12f   : > { %703 = vst.msk [vmem:[#allocation2 + $0x1e] sm:$0x3] %vm699_vm14, %v634_v55  ;;  %1419 = vmatprep.mubr.msk.f32.mxu1 %vm1016_vm2, %v996_v56  ;;  %804 = vrot.lane.b32.xlu1 %v1772_v9, %s1628_s29 }
 0x130   : > { %802 = vrot.lane.b32.xlu0 %v1775_v10, %s1628_s29 }
 0x131   : > { %v658_v57 = vpop.permute.xlu1 %657  ;;  %v656_v58 = vpop.permute.xlu0 %655 }
 0x132   : > { %715 = vst.msk [vmem:[#allocation2 + $0x5e] sm:$0x3] %vm699_vm14, %v658_v57 }
 0x133   : > { %714 = vst.msk [vmem:[#allocation2 + $0x56] sm:$0xff] %vm697_vm12, %v656_v58  ;;  %828 = vrot.lane.b32.xlu1 %v2178_v16, %s1628_s29 }
 0x134   : > { %826 = vrot.lane.b32.xlu0 %v2181_v19, %s1628_s29 }
 0x135   : > { %v918_v59 = vpop.permute.xlu1 %917  ;;  %v894_v60 = vpop.permute.xlu0 %893 }
 0x136   : > { %978 = vst.msk [vmem:[#allocation2 + $0x4e] sm:$0x3] %vm965_vm13, %v918_v59  ;;  %966 = vst.msk [vmem:[#allocation2 + $0xe] sm:$0x3] %vm965_vm13, %v894_v60 }
 0x137   : > { %544 = vrot.lane.b32.xlu1 %v1772_v9, %s1625_s24 }
 0x138   : > { %542 = vrot.lane.b32.xlu0 %v1775_v10, %s1625_s24 }
 0x139   : > { %v372_v61 = vpop.permute.xlu1 %371  ;;  %v370_v62 = vpop.permute.xlu0 %369 }
 0x13a   : > { %439 = vst.msk [vmem:[#allocation2 + $0x26] sm:$0xff] %vm431_vm5, %v372_v61 }
 0x13b   : > { %438 = vst.msk [vmem:[#allocation2 + $0x1e] sm:$0xfc] %vm429_vm6, %v370_v62  ;;  %566 = vrot.lane.b32.xlu1 %v2181_v19, %s1625_s24 }
 0x13c   : > { %546 = vrot.lane.b32.xlu0 %v1848_v20, %s1625_s24 }
 0x13d   : > { %v394_v0 = vpop.permute.xlu1 %393  ;;  %v374_v1 = vpop.permute.xlu0 %373  ;;  %v989_v2 = vld [vmem:[#allocation2 + $0x8] sm:$0xff] }
 0x13e   : > { %v997_v3 = vld [vmem:[#allocation2 + $0x48] sm:$0xff]  ;;  %450 = vst.msk [vmem:[#allocation2 + $0x5e] sm:$0xfc] %vm429_vm6, %v394_v0  ;;  %1408 = vmatmul.mubr.msk.f32.vlgmr.msra.gmra.mrb[0].mxu0 %vm1016_vm2, %v989_v2 }
 0x13f   : > { %440 = vst.msk [vmem:[#allocation2 + $0x2e] sm:$0x3] %vm433_vm7, %v374_v1  ;;  %1420 = vmatmul.mubr.msk.f32.vlgmr.msra.gmra.mrb[0].mxu1 %vm1016_vm2, %v997_v3  ;;  %570 = vrot.lane.b32.xlu1 %v213_v63, %s1625_s24 }
 0x140   : > { %568 = vrot.lane.b32.xlu0 %v2178_v16, %s1625_s24  ;;  %s1530_s24 = sshll.u32 %s1630_s21, 4  ;;  %s1531_s24 = int_to_ptr.vmem [resolvable:$false] %s1530_s24 }
 0x141   : > { %v398_v4 = vpop.permute.xlu1 %397  ;;  %v396_v5 = vpop.permute.xlu0 %395 }
 0x142   : > { %452 = vst.msk [vmem:[#allocation2 + $0x6e] sm:$0x3] %vm433_vm7, %v398_v4 }
 0x143   : > { %451 = vst.msk [vmem:[#allocation2 + $0x66] sm:$0xff] %vm431_vm5, %v396_v5  ;;  %830 = vrot.lane.b32.xlu1 %v213_v63, %s1628_s29 }
 0x144   : > { %806 = vrot.lane.b32.xlu0 %v1848_v20, %s1628_s29 }
 0x145   : > { %v731_v6 = vpop.permute.xlu1 %730  ;;  %v729_v12 = vpop.permute.xlu0 %728 }
 0x146   : > { %776 = vst.msk [vmem:[#allocation2 + $0x18] sm:$0xff] %vm772_vm15, %v731_v6  ;;  %775 = vst.msk [vmem:[#allocation2 + $0x10] sm:$0xff] %vm772_vm15, %v729_v12 }
 0x147   : > { %903 = vrot.lane.b32.xlu1 %v1772_v9, %s1629_s4 }
 0x148   : > { %901 = vrot.lane.b32.xlu0 %v1775_v10, %s1629_s4 }
 0x149   : > { %v747_v14 = vpop.permute.xlu1 %746  ;;  %v745_v15 = vpop.permute.xlu0 %744 }
 0x14a   : > { %784 = vst.msk [vmem:[#allocation2 + $0x58] sm:$0xff] %vm772_vm15, %v747_v14  ;;  %783 = vst.msk [vmem:[#allocation2 + $0x50] sm:$0xff] %vm772_vm15, %v745_v15 }
 0x14b   : > { %927 = vrot.lane.b32.xlu1 %v2178_v16, %s1629_s4 }
 0x14c   : > { %925 = vrot.lane.b32.xlu0 %v2181_v19, %s1629_s4 }
 0x14d   : > { %v469_v18 = vpop.permute.xlu1 %468  ;;  %v467_v22 = vpop.permute.xlu0 %466 }
 0x14e   : > { %512 = vst.msk [vmem:[#allocation2 + $0x28] sm:$0xff] %vm506_vm8, %v469_v18  ;;  %511 = vst.msk [vmem:[#allocation2 + $0x20] sm:$0xff] %vm506_vm8, %v467_v22 }
 0x14f   : > { %643 = vrot.lane.b32.xlu1 %v1772_v9, %s1626_s27 }
 0x150   : > { %641 = vrot.lane.b32.xlu0 %v1775_v10, %s1626_s27 }
 0x151   : > { %v485_v24 = vpop.permute.xlu1 %484  ;;  %v483_v25 = vpop.permute.xlu0 %482 }
 0x152   : > { %520 = vst.msk [vmem:[#allocation2 + $0x68] sm:$0xff] %vm506_vm8, %v485_v24  ;;  %519 = vst.msk [vmem:[#allocation2 + $0x60] sm:$0xff] %vm506_vm8, %v483_v25 }
 0x153   : > { %665 = vrot.lane.b32.xlu1 %v2181_v19, %s1626_s27 }
 0x154   : > { %645 = vrot.lane.b32.xlu0 %v1848_v20, %s1626_s27 }
 0x155   : > { %v799_v26 = vpop.permute.xlu1 %798  ;;  %v797_v27 = vpop.permute.xlu0 %796 }
 0x156   : > { %869 = vst.msk [vmem:[#allocation2 + $0x17] sm:$0xff] %vm864_vm0, %v799_v26 }
 0x157   : > { %868 = vst.msk [vmem:[#allocation2 + $0xf] sm:$0xfe] %vm2501_vm1, %v797_v27  ;;  %669 = vrot.lane.b32.xlu1 %v213_v63, %s1626_s27 }
 0x158   : > { %667 = vrot.lane.b32.xlu0 %v2178_v16, %s1626_s27  ;;  %s1346_s27 = sshll.u32 %s175_s10, 7 }
 0x159   : > { %v823_v9 = vpop.permute.xlu1 %822  ;;  %v821_v10 = vpop.permute.xlu0 %820 }
 0x15a   : > { %881 = vst.msk [vmem:[#allocation2 + $0x57] sm:$0xff] %vm864_vm0, %v823_v9 }
 0x15b   : > { %880 = vst.msk [vmem:[#allocation2 + $0x4f] sm:$0xfe] %vm2501_vm1, %v821_v10  ;;  %929 = vrot.lane.b32.xlu1 %v213_v63, %s1629_s4 }
 0x15c   : > { %905 = vrot.lane.b32.xlu0 %v1848_v20, %s1629_s4 }
 0x15d   : > { %v539_v28 = vpop.permute.xlu1 %538  ;;  %v537_v29 = vpop.permute.xlu0 %536 }
 0x15e   : > { %606 = vst.msk [vmem:[#allocation2 + $0x27] sm:$0xff] %vm598_vm9, %v539_v28 }
 0x15f   : > { %605 = vst.msk [vmem:[#allocation2 + $0x1f] sm:$0xfe] %vm2500_vm10, %v537_v29  ;;  %738 = vrot.lane.b32.xlu1 %v1795_v13, %s1627_s28 }
 0x160   : > { %736 = vrot.lane.b32.xlu0 %v1783_v11, %s1627_s28 }
 0x161   : > { %v561_v32 = vpop.permute.xlu1 %560  ;;  %v541_v33 = vpop.permute.xlu0 %540 }
 0x162   : > { %617 = vst.msk [vmem:[#allocation2 + $0x5f] sm:$0xfe] %vm2500_vm10, %v561_v32  ;;  %vm2504_vm10 = vcmask 254176  }
 0x163   : > { %607 = vst.msk [vmem:[#allocation2 + $0x2f] sm:$0x1] %vm600_vm11, %v541_v33  ;;  %754 = vrot.lane.b32.xlu1 %v215_v30, %s1627_s28  ;;  %vm2505_vm1 = vmmov %vm2504_vm10 }
 0x164   : > { %752 = vrot.lane.b32.xlu0 %v214_v31, %s1627_s28  ;;  %s2399_s28 = scalar_lea.vmem [#allocation3], %s1346_s27  ;;  %s1532_s27 = scalar_lea.vmem %s1531_s24, 4096 }
 0x165   : > { %v565_v20 = vpop.permute.xlu1 %564  ;;  %v563_v34 = vpop.permute.xlu0 %562  ;;  %s1263_s5 = sshll.u32 %s2399_s28, 4  ;;  %s2433_s5 = int_to_ptr.vmem [resolvable:$true] %s1263_s5 }
 0x166   : > { %619 = vst.msk [vmem:[#allocation2 + $0x6f] sm:$0x1] %vm600_vm11, %v565_v20  ;;  %s1526_s8 = scalar_lea.vmem %s2433_s5, 2048  ;;  %p1533_p2 = scmp.lt.s32.totalorder %s2433_s5, %s1531_s24 }
 0x167   : > { %618 = vst.msk [vmem:[#allocation2 + $0x67] sm:$0xff] %vm598_vm9, %v563_v34  ;;  %810 = vrot.lane.b32.xlu1 %v1795_v13, %s1628_s29  ;;  %p1527_p13 = scmp.ne.s32.totalorder %s2433_s5, %s1526_s8  ;;  %p1534_p4 = scmp.lt.s32.totalorder %s1532_s27, %s1526_s8 }
 0x168   : > { %808 = vrot.lane.b32.xlu0 %v1783_v11, %s1628_s29 }
 0x169   : > { %v825_v35 = vpop.permute.xlu1 %824  ;;  %v801_v36 = vpop.permute.xlu0 %800  ;;  %p1528_p0 = pnand %p1527_p13, %p1703_p3  ;;  %p1535_p5 = por %p1534_p4, %p1533_p2 }
 0x16a   : > { %882 = vst.msk [vmem:[#allocation2 + $0x5f] sm:$0x1] %vm2504_vm10, %v825_v35  ;;  %vm2506_vm10 = vcmask 195746  }
 0x16b   : > { %870 = vst.msk [vmem:[#allocation2 + $0x1f] sm:$0x1] %vm2505_vm1, %v801_v36  ;;  %834 = vrot.lane.b32.xlu1 %v215_v30, %s1628_s29  ;;  %vm2507_vm1 = vmmov %vm2506_vm10  ;;  %p1529_p1 = pneg %p1528_p0 }
 0x16c   : > { %832 = vrot.lane.b32.xlu0 %v214_v31, %s1628_s29 }
 0x16d   : > { %v898_v38 = vpop.permute.xlu1 %897  ;;  %v896_v39 = vpop.permute.xlu0 %895  ;;  %p1536_p6 = pnand %p1535_p5, %p1529_p1 }
 0x16e   : > { %968 = vst.msk [vmem:[#allocation2 + $0x16] sm:$0xff] %vm963_vm3, %v898_v38 }
 0x16f   : > { %967 = vst.msk [vmem:[#allocation2 + $0xe] sm:$0xfc] %vm961_vm4, %v896_v39  ;;  %836 = vrot.lane.b32.xlu1 %v216_v37, %s1628_s29 }
 0x170   : > { %812 = vrot.lane.b32.xlu0 %v1855_v21, %s1628_s29  ;;  %s1375_s29 = sshll.u32 %s1604_s15, 4 }
 0x171   : > { %v922_v40 = vpop.permute.xlu1 %921  ;;  %v920_v41 = vpop.permute.xlu0 %919 }
 0x172   : > { %980 = vst.msk [vmem:[#allocation2 + $0x56] sm:$0xff] %vm963_vm3, %v922_v40 }
 0x173   : > { %979 = vst.msk [vmem:[#allocation2 + $0x4e] sm:$0xfc] %vm961_vm4, %v920_v41  ;;  %909 = vrot.lane.b32.xlu1 %v1795_v13, %s1629_s4 }
 0x174   : > { %907 = vrot.lane.b32.xlu0 %v1783_v11, %s1629_s4 }
 0x175   : > { %v638_v42 = vpop.permute.xlu1 %637  ;;  %v636_v43 = vpop.permute.xlu0 %635 }
 0x176   : > { %v990_v44 = vld [vmem:[#allocation2 + $0x10] sm:$0xff]  ;;  %705 = vst.msk [vmem:[#allocation2 + $0x26] sm:$0xff] %vm697_vm12, %v638_v42 }
 0x177   : > { %704 = vst.msk [vmem:[#allocation2 + $0x1e] sm:$0xfc] %vm2506_vm10, %v636_v43  ;;  %1410 = vmatprep.mubr.msk.f32.mxu0 %vm1016_vm2, %v990_v44  ;;  %933 = vrot.lane.b32.xlu1 %v215_v30, %s1629_s4  ;;  %vm2512_vm10 = vcmask 254176  }
 0x178   : > { %931 = vrot.lane.b32.xlu0 %v214_v31, %s1629_s4 }
 0x179   : > { %v660_v45 = vpop.permute.xlu1 %659  ;;  %v640_v46 = vpop.permute.xlu0 %639 }
 0x17a   : > { %v998_v47 = vld [vmem:[#allocation2 + $0x50] sm:$0xff]  ;;  %716 = vst.msk [vmem:[#allocation2 + $0x5e] sm:$0xfc] %vm2507_vm1, %v660_v45  ;;  %vm2513_vm1 = vmmov %vm2512_vm10 }
 0x17b   : > { %706 = vst.msk [vmem:[#allocation2 + $0x2e] sm:$0x3] %vm699_vm14, %v640_v46  ;;  %1422 = vmatprep.mubr.msk.f32.mxu1 %vm1016_vm2, %v998_v47  ;;  %935 = vrot.lane.b32.xlu1 %v216_v37, %s1629_s4 }
 0x17c   : > { %911 = vrot.lane.b32.xlu0 %v1855_v21, %s1629_s4  ;;  %s1371_s4 = sshll.u32 %s1608_s16, 5 }
 0x17d   : > { %v664_v11 = vpop.permute.xlu1 %663  ;;  %v662_v13 = vpop.permute.xlu0 %661  ;;  %s1260_s9 = sadd.s32 %s1375_s29, %s1371_s4 }
 0x17e   : > { %718 = vst.msk [vmem:[#allocation2 + $0x6e] sm:$0x3] %vm699_vm14, %v664_v11  ;;  %s1372_s11 = sshll.u32 %s1260_s9, 7 }
 0x17f   : > { %717 = vst.msk [vmem:[#allocation2 + $0x66] sm:$0xff] %vm697_vm12, %v662_v13  ;;  %s2431_s6 = scalar_lea.hbm %s2497_s3, %s1372_s11 }
 0x181   : > { %v924_v48 = vpop.permute.xlu1 %923  ;;  %v900_v7 = vpop.permute.xlu0 %899 }
 0x182   : > { %981 = vst.msk [vmem:[#allocation2 + $0x5e] sm:$0x3] %vm965_vm13, %v924_v48  ;;  %969 = vst.msk [vmem:[#allocation2 + $0x1e] sm:$0x3] %vm965_vm13, %v900_v7 }
 0x185   : > { %v378_v8 = vpop.permute.xlu1 %377  ;;  %v376_v16 = vpop.permute.xlu0 %375 }
 0x186   : > { %442 = vst.msk [vmem:[#allocation2 + $0x36] sm:$0xff] %vm431_vm5, %v378_v8  ;;  %v2391_v8 = vld [vmem:[%s2496_s2] ss:$0 sm:$0xff] }
 0x187   : > { %441 = vst.msk [vmem:[#allocation2 + $0x2e] sm:$0xfc] %vm429_vm6, %v376_v16 }
 0x189   : > { %v400_v19 = vpop.permute.xlu1 %399  ;;  %v380_v21 = vpop.permute.xlu0 %379  ;;  %v991_v17 = vld [vmem:[#allocation2 + $0x18] sm:$0xff] }
 0x18a   : > { %v999_v23 = vld [vmem:[#allocation2 + $0x58] sm:$0xff]  ;;  %453 = vst.msk [vmem:[#allocation2 + $0x6e] sm:$0xfc] %vm429_vm6, %v400_v19  ;;  %1411 = vmatmul.mubr.msk.f32.gmra.mrb[2].mxu0 %vm1016_vm2, %v991_v17 }
 0x18b   : > { %443 = vst.msk [vmem:[#allocation2 + $0x3e] sm:$0x3] %vm433_vm7, %v380_v21  ;;  %1423 = vmatmul.mubr.msk.f32.gmra.mrb[2].mxu1 %vm1016_vm2, %v999_v23 }
 0x18d   : > { %v404_v49 = vpop.permute.xlu1 %403  ;;  %v402_v50 = vpop.permute.xlu0 %401 }
 0x18e   : > { %455 = vst.msk [vmem:[#allocation2 + $0x7e] sm:$0x3] %vm433_vm7, %v404_v49  ;;  %vm2510_vm7 = vcmask 162945  }
 0x18f   : > { %454 = vst.msk [vmem:[#allocation2 + $0x76] sm:$0xff] %vm431_vm5, %v402_v50  ;;  %vm2508_vm5 = vcmask 261345  }
 0x190   : > { %vm2509_vm6 = vmmov %vm2508_vm5 }
 0x191   : > { %v735_v51 = vpop.permute.xlu1 %734  ;;  %v733_v52 = vpop.permute.xlu0 %732 }
 0x192   : > { %778 = vst.msk [vmem:[#allocation2 + $0x28] sm:$0xff] %vm772_vm15, %v735_v51  ;;  %777 = vst.msk [vmem:[#allocation2 + $0x20] sm:$0xff] %vm772_vm15, %v733_v52 }
 0x195   : > { %v751_v53 = vpop.permute.xlu1 %750  ;;  %v749_v54 = vpop.permute.xlu0 %748 }
 0x196   : > { %786 = vst.msk [vmem:[#allocation2 + $0x68] sm:$0xff] %vm772_vm15, %v751_v53  ;;  %785 = vst.msk [vmem:[#allocation2 + $0x60] sm:$0xff] %vm772_vm15, %v749_v54 }
 0x199   : > { %v473_v55 = vpop.permute.xlu1 %472  ;;  %v471_v56 = vpop.permute.xlu0 %470 }
 0x19a   : > { %514 = vst.msk [vmem:[#allocation2 + $0x38] sm:$0xff] %vm506_vm8, %v473_v55  ;;  %513 = vst.msk [vmem:[#allocation2 + $0x30] sm:$0xff] %vm506_vm8, %v471_v56 }
 0x19d   : > { %v489_v57 = vpop.permute.xlu1 %488 }
 0x19e   : > { %v487_v58 = vpop.permute.xlu0 %486  ;;  %522 = vst.msk [vmem:[#allocation2 + $0x78] sm:$0xff] %vm506_vm8, %v489_v57 }
 0x19f   : > { %521 = vst.msk [vmem:[#allocation2 + $0x70] sm:$0xff] %vm506_vm8, %v487_v58  ;;  %vm2511_vm8 = vmmov %vm2510_vm7 }
 0x1a1   : > { %v805_v59 = vpop.permute.xlu1 %804 }
 0x1a2   : > { %v803_v60 = vpop.permute.xlu0 %802  ;;  %872 = vst.msk [vmem:[#allocation2 + $0x27] sm:$0xff] %vm864_vm0, %v805_v59 }
 0x1a3   : > { %871 = vst.msk [vmem:[#allocation2 + $0x1f] sm:$0xfe] %vm2508_vm5, %v803_v60 }
 0x1a5   : > { %v829_v61 = vpop.permute.xlu1 %828 }
 0x1a6   : > { %v827_v62 = vpop.permute.xlu0 %826  ;;  %884 = vst.msk [vmem:[#allocation2 + $0x67] sm:$0xff] %vm864_vm0, %v829_v61 }
 0x1a7   : > { %883 = vst.msk [vmem:[#allocation2 + $0x5f] sm:$0xfe] %vm2509_vm6, %v827_v62 }
 0x1a9   : > { %v545_v63 = vpop.permute.xlu1 %544 }
 0x1aa   : > { %v543_v0 = vpop.permute.xlu0 %542  ;;  %609 = vst.msk [vmem:[#allocation2 + $0x37] sm:$0xff] %vm598_vm9, %v545_v63 }
 0x1ab   : > { %608 = vst.msk [vmem:[#allocation2 + $0x2f] sm:$0xfe] %vm2510_vm7, %v543_v0 }
 0x1ad   : > { %v567_v1 = vpop.permute.xlu1 %566 }
 0x1ae   : > { %v547_v2 = vpop.permute.xlu0 %546  ;;  %620 = vst.msk [vmem:[#allocation2 + $0x6f] sm:$0xfe] %vm2511_vm8, %v567_v1 }
 0x1af   : > { %610 = vst.msk [vmem:[#allocation2 + $0x3f] sm:$0x1] %vm600_vm11, %v547_v2 }
 0x1b1   : > { %v571_v3 = vpop.permute.xlu1 %570 }
 0x1b2   : > { %v569_v4 = vpop.permute.xlu0 %568  ;;  %622 = vst.msk [vmem:[#allocation2 + $0x7f] sm:$0x1] %vm600_vm11, %v571_v3 }
 0x1b3   : > { %621 = vst.msk [vmem:[#allocation2 + $0x77] sm:$0xff] %vm598_vm9, %v569_v4  ;;  %vm2514_vm9 = vcmask 195746  }
 0x1b4   : > { %vm2515_vm11 = vmmov %vm2514_vm9 }
 0x1b5   : > { %v831_v5 = vpop.permute.xlu1 %830 }
 0x1b6   : > { %v807_v6 = vpop.permute.xlu0 %806  ;;  %885 = vst.msk [vmem:[#allocation2 + $0x6f] sm:$0x1] %vm2512_vm10, %v831_v5 }
 0x1b7   : > { %873 = vst.msk [vmem:[#allocation2 + $0x2f] sm:$0x1] %vm2513_vm1, %v807_v6 }
 0x1b9   : > { %v904_v12 = vpop.permute.xlu1 %903 }
 0x1ba   : > { %v902_v14 = vpop.permute.xlu0 %901  ;;  %971 = vst.msk [vmem:[#allocation2 + $0x26] sm:$0xff] %vm963_vm3, %v904_v12 }
 0x1bb   : > { %970 = vst.msk [vmem:[#allocation2 + $0x1e] sm:$0xfc] %vm961_vm4, %v902_v14 }
 0x1bd   : > { %v928_v15 = vpop.permute.xlu1 %927 }
 0x1be   : > { %v926_v18 = vpop.permute.xlu0 %925  ;;  %983 = vst.msk [vmem:[#allocation2 + $0x66] sm:$0xff] %vm963_vm3, %v928_v15 }
 0x1bf   : > { %982 = vst.msk [vmem:[#allocation2 + $0x5e] sm:$0xfc] %vm961_vm4, %v926_v18 }
 0x1c1   : > { %v644_v22 = vpop.permute.xlu1 %643 }
 0x1c2   : > { %v642_v24 = vpop.permute.xlu0 %641  ;;  %v992_v25 = vld [vmem:[#allocation2 + $0x20] sm:$0xff]  ;;  %708 = vst.msk [vmem:[#allocation2 + $0x36] sm:$0xff] %vm697_vm12, %v644_v22 }
 0x1c3   : > { %707 = vst.msk [vmem:[#allocation2 + $0x2e] sm:$0xfc] %vm2514_vm9, %v642_v24  ;;  %1413 = vmatprep.mubr.msk.f32.mxu0 %vm1016_vm2, %v992_v25 }
 0x1c5   : > { %v666_v26 = vpop.permute.xlu1 %665 }
 0x1c6   : > { %v646_v27 = vpop.permute.xlu0 %645  ;;  %v1000_v9 = vld [vmem:[#allocation2 + $0x60] sm:$0xff]  ;;  %719 = vst.msk [vmem:[#allocation2 + $0x6e] sm:$0xfc] %vm2515_vm11, %v666_v26 }
 0x1c7   : > { %709 = vst.msk [vmem:[#allocation2 + $0x3e] sm:$0x3] %vm699_vm14, %v646_v27  ;;  %1425 = vmatprep.mubr.msk.f32.mxu1 %vm1016_vm2, %v1000_v9 }
 0x1c9   : > { %v670_v10 = vpop.permute.xlu1 %669 }
 0x1ca   : > { %v668_v28 = vpop.permute.xlu0 %667  ;;  %721 = vst.msk [vmem:[#allocation2 + $0x7e] sm:$0x3] %vm699_vm14, %v670_v10  ;;  %vm2517_vm14 = vmmov %vm2508_vm5 }
 0x1cb   : > { %720 = vst.msk [vmem:[#allocation2 + $0x76] sm:$0xff] %vm697_vm12, %v668_v28  ;;  %vm2516_vm12 = vmmov %vm2508_vm5 }
 0x1cc   : > { %vm2518_vm5 = vmmov %vm2513_vm1 }
 0x1cd   : > { %v930_v29 = vpop.permute.xlu1 %929 }
 0x1ce   : > { %v906_v30 = vpop.permute.xlu0 %905  ;;  %984 = vst.msk [vmem:[#allocation2 + $0x6e] sm:$0x3] %vm965_vm13, %v930_v29 }
 0x1cf   : > { %972 = vst.msk [vmem:[#allocation2 + $0x2e] sm:$0x3] %vm965_vm13, %v906_v30 }
 0x1d1   : > { %v739_v31 = vpop.permute.xlu1 %738 }
 0x1d2   : > { %v737_v32 = vpop.permute.xlu0 %736  ;;  %780 = vst.msk [vmem:[#allocation2 + $0x38] sm:$0xff] %vm772_vm15, %v739_v31 }
 0x1d3   : > { %779 = vst.msk [vmem:[#allocation2 + $0x30] sm:$0xff] %vm772_vm15, %v737_v32 }
 0x1d5   : > { %v755_v33 = vpop.permute.xlu1 %754  ;;  %v1001_v35 = vld [vmem:[#allocation2 + $0x68] sm:$0xff] }
 0x1d6   : > { %v753_v20 = vpop.permute.xlu0 %752  ;;  %v993_v34 = vld [vmem:[#allocation2 + $0x28] sm:$0xff]  ;;  %788 = vst.msk [vmem:[#allocation2 + $0x78] sm:$0xff] %vm772_vm15, %v755_v33  ;;  %1426 = vmatmul.mubr.msk.f32.gmra.mrb[4].mxu1 %vm1016_vm2, %v1001_v35 }
 0x1d7   : > { %787 = vst.msk [vmem:[#allocation2 + $0x70] sm:$0xff] %vm772_vm15, %v753_v20  ;;  %1414 = vmatmul.mubr.msk.f32.gmra.mrb[4].mxu0 %vm1016_vm2, %v993_v34  ;;  %vm2519_vm15 = vmmov %vm2513_vm1 }
 0x1d9   : > { %v811_v36 = vpop.permute.xlu1 %810 }
 0x1da   : > { %v809_v37 = vpop.permute.xlu0 %808  ;;  %875 = vst.msk [vmem:[#allocation2 + $0x37] sm:$0xff] %vm864_vm0, %v811_v36 }
 0x1db   : > { %874 = vst.msk [vmem:[#allocation2 + $0x2f] sm:$0xfe] %vm2516_vm12, %v809_v37 }
 0x1dd   : > { %v835_v38 = vpop.permute.xlu1 %834 }
 0x1de   : > { %v833_v39 = vpop.permute.xlu0 %832  ;;  %887 = vst.msk [vmem:[#allocation2 + $0x77] sm:$0xff] %vm864_vm0, %v835_v38 }
 0x1df   : > { %886 = vst.msk [vmem:[#allocation2 + $0x6f] sm:$0xfe] %vm2517_vm14, %v833_v39 }
 0x1e1   : > { %v837_v40 = vpop.permute.xlu1 %836 }
 0x1e2   : > { %v813_v41 = vpop.permute.xlu0 %812  ;;  %888 = vst.msk [vmem:[#allocation2 + $0x7f] sm:$0x1] %vm2518_vm5, %v837_v40 }
 0x1e3   : > { %876 = vst.msk [vmem:[#allocation2 + $0x3f] sm:$0x1] %vm2519_vm15, %v813_v41 }
 0x1e5   : > { %v910_v42 = vpop.permute.xlu1 %909 }
 0x1e6   : > { %v908_v43 = vpop.permute.xlu0 %907  ;;  %974 = vst.msk [vmem:[#allocation2 + $0x36] sm:$0xff] %vm963_vm3, %v910_v42 }
 0x1e7   : > { %973 = vst.msk [vmem:[#allocation2 + $0x2e] sm:$0xfc] %vm961_vm4, %v908_v43 }
 0x1e9   : > { %v934_v44 = vpop.permute.xlu1 %933 }
 0x1ea   : > { %v932_v45 = vpop.permute.xlu0 %931  ;;  %986 = vst.msk [vmem:[#allocation2 + $0x76] sm:$0xff] %vm963_vm3, %v934_v44 }
 0x1eb   : > { %985 = vst.msk [vmem:[#allocation2 + $0x6e] sm:$0xfc] %vm961_vm4, %v932_v45 }
 0x1ed   : > { %v936_v46 = vpop.permute.xlu1 %935 }
 0x1ee   : > { %v912_v47 = vpop.permute.xlu0 %911  ;;  %v994_v11 = vld [vmem:[#allocation2 + $0x30] sm:$0xff]  ;;  %987 = vst.msk [vmem:[#allocation2 + $0x7e] sm:$0x3] %vm965_vm13, %v936_v46 }
 0x1ef   : > { %975 = vst.msk [vmem:[#allocation2 + $0x3e] sm:$0x3] %vm965_vm13, %v912_v47  ;;  %1416 = vmatprep.mubr.msk.f32.mxu0 %vm1016_vm2, %v994_v11 }
 0x1f2   : > { %v1002_v13 = vld [vmem:[#allocation2 + $0x70] sm:$0xff] }
 0x1f3   : > { %1428 = vmatprep.mubr.msk.f32.mxu1 %vm1016_vm2, %v1002_v13 }
 0x1f5   : > { %v1003_v7 = vld [vmem:[#allocation2 + $0x78] sm:$0xff] }
 0x1f6   : > { %v995_v48 = vld [vmem:[#allocation2 + $0x38] sm:$0xff]  ;;  %1429 = vmatmul.mubr.msk.f32.gmra.mrb[6].mxu1 %vm1016_vm2, %v1003_v7 }
 0x1f7   : > { %1417 = vmatmul.mubr.msk.f32.gmra.mrb[6].mxu0 %vm1016_vm2, %v995_v48 }
 0x211   : > { %v1409_v16 = vpop.f32.mrb[0].mxu0 }
 0x212   : > { %v1421_v19 = vpop.f32.mrb[0].mxu1  ;;  %v1141_v21 = vadd.f32 %v1409_v16, %v2391_v8  ;;  %v1135_v23 = vpop.f32.mrb[1].mxu0 }
 0x213   : > { %v1181_v17 = vadd.f32 %v1421_v19, %v2391_v8  ;;  %v1175_v49 = vpop.f32.mrb[1].mxu1  ;;  %v1136_v50 = vadd.f32 %v2391_v8, %v1135_v23 }
 0x214   : > { %v1176_v51 = vadd.f32 %v2391_v8, %v1175_v49  ;;  %v1215_v52 = vmax.f32 %v1141_v21, 0.0 }
 0x215   : > { %v1223_v53 = vmax.f32 %v1181_v17, 0.0  ;;  %v1214_v54 = vmax.f32 %v1136_v50, 0.0 }
 0x216   : > { %v1222_v55 = vmax.f32 %v1176_v51, 0.0  ;;  %1231 = vst [vmem:[%s2399_s28 + $0x8] sm:$0xff] %v1215_v52 }
 0x217   : > { %1239 = vst [vmem:[%s2399_s28 + $0x48] sm:$0xff] %v1223_v53  ;;  %1230 = vst [vmem:[%s2399_s28] sm:$0xff] %v1214_v54 }
 0x218   : > { %1238 = vst [vmem:[%s2399_s28 + $0x40] sm:$0xff] %v1222_v55 }
 0x25d   : > { %v1412_v56 = vpop.f32.mrb[2].mxu0 }
 0x25e   : > { %v1424_v57 = vpop.f32.mrb[2].mxu1  ;;  %v1151_v58 = vadd.f32 %v1412_v56, %v2391_v8  ;;  %v1145_v60 = vpop.f32.mrb[3].mxu0 }
 0x25f   : > { %v1191_v59 = vadd.f32 %v1424_v57, %v2391_v8  ;;  %v1185_v61 = vpop.f32.mrb[3].mxu1  ;;  %v1146_v62 = vadd.f32 %v2391_v8, %v1145_v60 }
 0x260   : > { %v1186_v63 = vadd.f32 %v2391_v8, %v1185_v61  ;;  %v1217_v0 = vmax.f32 %v1151_v58, 0.0 }
 0x261   : > { %v1225_v1 = vmax.f32 %v1191_v59, 0.0  ;;  %v1216_v2 = vmax.f32 %v1146_v62, 0.0 }
 0x262   : > { %v1224_v3 = vmax.f32 %v1186_v63, 0.0  ;;  %1233 = vst [vmem:[%s2399_s28 + $0x18] sm:$0xff] %v1217_v0 }
 0x263   : > { %1241 = vst [vmem:[%s2399_s28 + $0x58] sm:$0xff] %v1225_v1  ;;  %1232 = vst [vmem:[%s2399_s28 + $0x10] sm:$0xff] %v1216_v2 }
 0x264   : > { %1240 = vst [vmem:[%s2399_s28 + $0x50] sm:$0xff] %v1224_v3 }
 0x2a9   : > { %v1427_v5 = vpop.f32.mrb[4].mxu1 }
 0x2aa   : > { %v1415_v4 = vpop.f32.mrb[4].mxu0  ;;  %v1201_v12 = vadd.f32 %v1427_v5, %v2391_v8  ;;  %v1195_v15 = vpop.f32.mrb[5].mxu1 }
 0x2ab   : > { %v1161_v6 = vadd.f32 %v1415_v4, %v2391_v8  ;;  %v1155_v14 = vpop.f32.mrb[5].mxu0  ;;  %v1196_v22 = vadd.f32 %v2391_v8, %v1195_v15 }
 0x2ac   : > { %v1156_v18 = vadd.f32 %v2391_v8, %v1155_v14  ;;  %v1227_v25 = vmax.f32 %v1201_v12, 0.0 }
 0x2ad   : > { %v1219_v24 = vmax.f32 %v1161_v6, 0.0  ;;  %v1226_v27 = vmax.f32 %v1196_v22, 0.0 }
 0x2ae   : > { %v1218_v26 = vmax.f32 %v1156_v18, 0.0  ;;  %1243 = vst [vmem:[%s2399_s28 + $0x68] sm:$0xff] %v1227_v25 }
 0x2af   : > { %1235 = vst [vmem:[%s2399_s28 + $0x28] sm:$0xff] %v1219_v24  ;;  %1242 = vst [vmem:[%s2399_s28 + $0x60] sm:$0xff] %v1226_v27 }
 0x2b0   : > { %1234 = vst [vmem:[%s2399_s28 + $0x20] sm:$0xff] %v1218_v26 }
 0x2c9   : > { %v1430_v10 = vpop.f32.mrb[6].mxu1 }
 0x2ca   : > { %v1418_v9 = vpop.f32.mrb[6].mxu0  ;;  %v1211_v29 = vadd.f32 %v1430_v10, %v2391_v8  ;;  %v1205_v31 = vpop.f32.mrb[7].mxu1 }
 0x2cb   : > { %v1171_v28 = vadd.f32 %v1418_v9, %v2391_v8  ;;  %v1165_v30 = vpop.f32.mrb[7].mxu0  ;;  %v1206_v33 = vadd.f32 %v2391_v8, %v1205_v31 }
 0x2cc   : > { %v1166_v32 = vadd.f32 %v2391_v8, %v1165_v30  ;;  %v1229_v34 = vmax.f32 %v1211_v29, 0.0 }
 0x2cd   : > { %v1221_v20 = vmax.f32 %v1171_v28, 0.0  ;;  %v1228_v36 = vmax.f32 %v1206_v33, 0.0 }
 0x2ce   : > { %v1220_v35 = vmax.f32 %v1166_v32, 0.0  ;;  %1245 = vst [vmem:[%s2399_s28 + $0x78] sm:$0xff] %v1229_v34 }
 0x2cf   : > { %1237 = vst [vmem:[%s2399_s28 + $0x38] sm:$0xff] %v1221_v20  ;;  %1244 = vst [vmem:[%s2399_s28 + $0x70] sm:$0xff] %v1228_v36 }
 0x2d0   : > { %1236 = vst [vmem:[%s2399_s28 + $0x30] sm:$0xff] %v1220_v35 }
 0x2d1   : > { %1539 = shalt.err (!%p1536_p6)
}
 0x2d2   : > { %s1540_s10 = scalar_lea.hbm %s2431_s6, 2048  ;;  %s1544_s4 = scalar_lea.hbm %s2497_s3, 8192 }
 0x2d3   : > { %p1541_p7 = scmp.ne.s32.totalorder %s2431_s6, %s1540_s10  ;;  %p1545_p11 = scmp.lt.u32.totalorder %s2431_s6, %s2497_s3 }
 0x2d4   : > { %p1546_p12 = scmp.lt.u32.totalorder %s1544_s4, %s1540_s10  ;;  %p1548_p0 = scmp.lt.u32.totalorder %s1540_s10, %s2431_s6 }
 0x2d5   : > { %p1542_p9 = pnand %p1541_p7, %p1703_p3 }
 0x2d6   : > { %p1547_p13 = por %p1546_p12, %p1545_p11 }
 0x2d7   : > { %p1543_p10 = pneg %p1542_p9 }
 0x2d8   : > { %p1549_p1 = por %p1548_p0, %p1547_p13 }
 0x2da   : > { %p1550_p2 = pnand %p1549_p1, %p1543_p10 }
 0x2dc   : > { %1553 = shalt.err (!%p1550_p2)
}
 0x2dd   : > { %s1631_s15 = smov 128  }
 0x2de   : > { %1446 = dma.vmem_to_hbm [thread:$0]  (%p1703_p3), %s2433_s5, 2048, %s2431_s6, %s2441_s7, %s1631_s15, %s1631_s15, %s1623_s20  }
 0x2df PF: > { %p1452_p4 = scmp.ge.s32.totalorder %s1620_s19, 2  ;;  %s1278_s16 = sand.u32 1, %s1592_s12  }
 0x2e0   : > { %s1279_s8 = scalar_lea.sflag [#allocation4], %s1278_s16 }
 0x2e1   : > { %p1449_p5 = pnand %p1452_p4, %p1712_p8 }
 0x2e3   : > { %1587 = dma.done.wait (!%p1449_p5), %s1279_s8, 2048  }
 0x2e4   : > { %1589 = vsyncadd (!%p1449_p5), %s1279_s8, 4294965248  ;;  %s16_s19 = sadd.s32 1, %s1620_s19   ;;  %s2520_s12 = smov %s1596_s13 }
 0x2e5   : > { %p13_p6 = scmp.ge.s32.totalorder %s16_s19, 6   ;;  %s2521_s13 = smov %s1600_s14 }
 0x2e6   : > { %s2522_s14 = smov %s1721_s30  ;;  %s2523_s15 = smov %s1612_s17 }
 0x2e7   : > { %s2524_s16 = smov %s1616_s18  ;;  %s2525_s17 = smov %s2528_s22 }
 0x2e8   : > { %s2526_s18 = smov %s2532_s23  ;;  %15 = sbr.rel (!%p13_p6) target bundleno = 5 (0x5), region = 68 }
 0x2ef   :  { %1284 = vsyncpa [#allocation4], 1 }
 0x2f0   :  { %1286 = vsyncpa [#allocation4 + $0x1], 1 }

</bundles_post_ra>
